<compile_context>
chip_gen: v7x
topology: tpu7x:2x2x1
jax: 0.10.0
libtpu: 0.0.40
codegen_flags: <defaults>
</compile_context>

<pallas_src>
import math
from functools import partial

import jax
import jax.numpy as jnp
from jax.experimental import pallas as pl
from jax.experimental.pallas import tpu as pltpu


# --------------------------------------------------------------------------
# helpers
# --------------------------------------------------------------------------
def _layer_norm(x, g, b, eps):
    mean = jnp.mean(x, axis=-1, keepdims=True)
    var = jnp.mean((x - mean) ** 2, axis=-1, keepdims=True)
    return (x - mean) * jax.lax.rsqrt(var + eps) * g + b


def _gelu(x):
    # exact (erf) GELU, matching torch.nn.GELU() default
    # (on v5e a tanh-approx GELU would offload to the EUP; kept exact here)
    return 0.5 * x * (1.0 + jax.lax.erf(x * (1.0 / math.sqrt(2.0))))


def _default_vmem_limit():
    """Scoped-VMEM limit that is safe on v5e/v6e (128 MiB) and v7x (64 MiB)."""
    try:
        cap = pltpu.get_tpu_info().vmem_capacity_bytes
        return int(min(100 * 2 ** 20, int(cap * 0.875)))
    except Exception:  # pragma: no cover - conservative fallback
        return 64 * 2 ** 20


# --------------------------------------------------------------------------
# fused kernel: one encoder layer for a whole batch tile.
#   grid = (B // Bt, L); activation lives in acc_ref (VMEM) across the
#   layer axis; the final-layer [CLS] rows are written to cls_ref.
# --------------------------------------------------------------------------
def encoder_layer_kernel(x0_ref, ln1g_ref, ln1b_ref, wqkv_ref, bqkv_ref,
                         wo_ref, bo_ref, ln2g_ref, ln2b_ref,
                         w1_ref, b1_ref, w2_ref, b2_ref,
                         cls_ref, acc_ref, *, num_heads):
    layer = pl.program_id(1)
    n_layers = pl.num_programs(1)

    # --- layer 0: seed the resident activation with LN(tok+pos) (done in JAX)
    @pl.when(layer == 0)
    def _():
        acc_ref[...] = x0_ref[...]                                 # (Bt, S, H)

    x = acc_ref[...]                                               # (Bt, S, H) f32
    Bt, S, H = x.shape
    hd = H // num_heads
    scale = 1.0 / math.sqrt(hd)

    # --- multi-head self-attention on layer_norm_1(x) -----------------------
    h = _layer_norm(x, ln1g_ref[0], ln1b_ref[0], 1e-5)             # (Bt, S, H)
    # fused QKV projection: one (Bt*S, H) @ (H, 3H) MXU pass
    h2 = h.reshape(Bt * S, H).astype(jnp.bfloat16)
    qkv = jnp.dot(h2, wqkv_ref[0],
                  preferred_element_type=jnp.float32) + bqkv_ref[0]  # (Bt*S,3H)
    qkv_bf = qkv.reshape(Bt, S, 3 * H).astype(jnp.bfloat16)

    # Per-head attention with the batch tile as the leading dot batch dim.
    # Packed column layout is [all-q heads | all-k heads | all-v heads], each
    # block ordered head0..head{nh-1}, matching the per-head q/k/v Linears
    # followed by concat in the PyTorch reference.
    ctx_heads = []
    for n in range(num_heads):
        qn = qkv_bf[:, :, n * hd:(n + 1) * hd]                     # (Bt,S,hd)
        kn = qkv_bf[:, :, H + n * hd:H + (n + 1) * hd]
        vn = qkv_bf[:, :, 2 * H + n * hd:2 * H + (n + 1) * hd]
        s = jnp.einsum("bqd,bkd->bqk", qn, kn,
                       preferred_element_type=jnp.float32) * scale  # (Bt,S,S)
        s = s - jnp.max(s, axis=-1, keepdims=True)
        e = jnp.exp(s)
        p = (e * pl.reciprocal(jnp.sum(e, axis=-1, keepdims=True),
                               approx=True)).astype(jnp.bfloat16)
        ctx_heads.append(jnp.einsum("bqk,bkd->bqd", p, vn,
                                    preferred_element_type=jnp.float32))
    ctx = jnp.concatenate(ctx_heads, axis=-1)                      # (Bt,S,H) f32

    attn = jnp.dot(ctx.reshape(Bt * S, H).astype(jnp.bfloat16), wo_ref[0],
                   preferred_element_type=jnp.float32) + bo_ref[0]
    x = x + attn.reshape(Bt, S, H)                                 # residual

    # --- feed forward on layer_norm_2(x) ------------------------------------
    hffn = _layer_norm(x, ln2g_ref[0], ln2b_ref[0], 1e-5)
    hffn = hffn.reshape(Bt * S, H).astype(jnp.bfloat16)
    ff = jnp.dot(hffn, w1_ref[0],
                 preferred_element_type=jnp.float32) + b1_ref[0]   # (Bt*S, I)
    ff = _gelu(ff).astype(jnp.bfloat16)
    ff = jnp.dot(ff, w2_ref[0],
                 preferred_element_type=jnp.float32) + b2_ref[0]   # (Bt*S, H)
    x = x + ff.reshape(Bt, S, H)                                   # residual

    acc_ref[...] = x                                               # carry

    # --- after the final layer, emit the [CLS] activations (classifier in JAX)
    @pl.when(layer == n_layers - 1)
    def _():
        cls_ref[...] = x[:, 0, :]                                  # (Bt, H)


# --------------------------------------------------------------------------
# parameter construction (deterministic, synthetic); matmul weights in bf16,
# LN params / biases / embeddings / classifier kept in f32.
# --------------------------------------------------------------------------
def init_params(key, cfg):
    H, I = cfg["hidden_size"], cfg["intermediate_size"]
    L, NL = cfg["num_hidden_layers"], cfg["num_labels"]
    keys = jax.random.split(key, 3 + L)

    def normal(k, shape, dtype=jnp.bfloat16, scale=0.02):
        return (scale * jax.random.normal(k, shape, dtype=jnp.float32)).astype(dtype)

    params = {
        "token_emb": normal(keys[0], (cfg["vocab_size"], H), jnp.float32),
        "pos_emb": normal(keys[1], (cfg["max_position_embeddings"], H), jnp.float32),
        "emb_ln_g": jnp.ones((H,), jnp.float32),
        "emb_ln_b": jnp.zeros((H,), jnp.float32),
        "clf_w": normal(keys[2], (H, NL), jnp.float32),
        "clf_b": jnp.zeros((NL,), jnp.float32),
    }

    names = ["ln1_g", "ln1_b", "wqkv", "bqkv", "wo", "bo",
             "ln2_g", "ln2_b", "w1", "b1", "w2", "b2"]
    lw = {n: [] for n in names}
    for li in range(L):
        lk = jax.random.split(keys[3 + li], 4)
        lw["ln1_g"].append(jnp.ones((1, H), jnp.float32))
        lw["ln1_b"].append(jnp.zeros((1, H), jnp.float32))
        # per-head q/k/v Linear(H, hd) weights packed column-wise as
        # [q_h0..q_h{n-1} | k_h0.. | v_h0..] into (H, 3H)
        lw["wqkv"].append(normal(lk[0], (H, 3 * H)))
        lw["bqkv"].append(jnp.zeros((1, 3 * H), jnp.float32))
        lw["wo"].append(normal(lk[1], (H, H)))
        lw["bo"].append(jnp.zeros((1, H), jnp.float32))
        lw["ln2_g"].append(jnp.ones((1, H), jnp.float32))
        lw["ln2_b"].append(jnp.zeros((1, H), jnp.float32))
        lw["w1"].append(normal(lk[2], (H, I)))
        lw["b1"].append(jnp.zeros((1, I), jnp.float32))
        lw["w2"].append(normal(lk[3], (I, H)))
        lw["b2"].append(jnp.zeros((1, H), jnp.float32))
    for n in names:
        params[n] = jnp.stack(lw[n], axis=0)                # leading layer axis
    return params


# --------------------------------------------------------------------------
# full forward pass: embedding glue (JAX) -> fused encoder kernel -> classifier
# --------------------------------------------------------------------------
def transformer_classify(input_ids, params, cfg, batch_tile=None):
    B, S = input_ids.shape
    H = cfg["hidden_size"]
    I = cfg["intermediate_size"]
    L = cfg["num_hidden_layers"]
    nh = cfg["num_attention_heads"]

    Bt = B if batch_tile is None else batch_tile
    assert B % Bt == 0, "batch_tile must divide the batch size"

    # --- embedding gather + add + LayerNorm (eps=1e-12) in plain JAX (glue) --
    tok = jnp.take(params["token_emb"], input_ids, axis=0)        # (B, S, H)
    pos = params["pos_emb"][:S][None, :, :]                       # (1, S, H)
    emb = tok + pos
    mean = jnp.mean(emb, axis=-1, keepdims=True)
    var = jnp.mean((emb - mean) ** 2, axis=-1, keepdims=True)
    x0 = (emb - mean) * jax.lax.rsqrt(var + 1e-12)
    x0 = x0 * params["emb_ln_g"] + params["emb_ln_b"]             # (B, S, H) f32

    # --- BlockSpecs ----------------------------------------------------------
    def wspec(shape):                       # per-layer weight, indexed by l
        nd = len(shape)
        return pl.BlockSpec((1,) + shape,
                            lambda bt, l, nd=nd: (l,) + (0,) * nd)

    in_specs = [
        pl.BlockSpec((Bt, S, H), lambda bt, l: (bt, 0, 0)),       # x0 (batch tile)
        wspec((1, H)), wspec((1, H)),                             # ln1 g/b
        wspec((H, 3 * H)), wspec((1, 3 * H)),                     # wqkv, bqkv
        wspec((H, H)), wspec((1, H)),                             # wo, bo
        wspec((1, H)), wspec((1, H)),                             # ln2 g/b
        wspec((H, I)), wspec((1, I)),                             # w1, b1
        wspec((I, H)), wspec((1, H)),                             # w2, b2
    ]

    kernel = partial(encoder_layer_kernel, num_heads=nh)
    cls = pl.pallas_call(
        kernel,
        grid=(B // Bt, L),                                        # layer axis innermost
        in_specs=in_specs,
        out_specs=pl.BlockSpec((Bt, H), lambda bt, l: (bt, 0)),
        out_shape=jax.ShapeDtypeStruct((B, H), jnp.float32),
        scratch_shapes=[pltpu.VMEM((Bt, S, H), jnp.float32)],     # resident activation
        compiler_params=pltpu.CompilerParams(
            dimension_semantics=("parallel", "arbitrary"),
            vmem_limit_bytes=_default_vmem_limit()),
    )(x0,
      params["ln1_g"], params["ln1_b"], params["wqkv"], params["bqkv"],
      params["wo"], params["bo"], params["ln2_g"], params["ln2_b"],
      params["w1"], params["b1"], params["w2"], params["b2"])

    # --- classifier head on [CLS] (tiny (B,H)@(H,NL) matmul; dropout = id) ---
    logits = cls @ params["clf_w"] + params["clf_b"]              # (B, num_labels)
    return logits


# --------------------------------------------------------------------------
if __name__ == "__main__":
    cfg = {
        "vocab_size": 100,
        "hidden_size": 32,
        "max_position_embeddings": 16,
        "num_attention_heads": 4,
        "intermediate_size": 128,
        "num_hidden_layers": 2,
        "num_labels": 3,
        "hidden_dropout_prob": 0.1,   # unused: dropout is identity in eval mode
    }
    key = jax.random.PRNGKey(0)
    k_params, k_ids = jax.random.split(key)
    params = init_params(k_params, cfg)

    batch, seq = 2, 8
    input_ids = jax.random.randint(k_ids, (batch, seq), 0, cfg["vocab_size"],
                                   dtype=jnp.int32)

    logits = transformer_classify(input_ids, params, cfg)
    jax.block_until_ready(logits)
    assert logits.shape == (batch, cfg["num_labels"])
    assert bool(jnp.all(jnp.isfinite(logits)))
    print("KERNEL_OK")
</pallas_src>

<mosaic_0001>
module attributes {stable_mosaic.version = 11 : i64} {
  func.func @encoder_layer_kernel(%arg0: i32, %arg1: i32, %arg2: memref<2x8x32xf32, #tpu.memory_space<vmem>>, %arg3: memref<1x1x32xf32, #tpu.memory_space<vmem>>, %arg4: memref<1x1x32xf32, #tpu.memory_space<vmem>>, %arg5: memref<1x32x96xbf16, #tpu.memory_space<vmem>>, %arg6: memref<1x1x96xf32, #tpu.memory_space<vmem>>, %arg7: memref<1x32x32xbf16, #tpu.memory_space<vmem>>, %arg8: memref<1x1x32xf32, #tpu.memory_space<vmem>>, %arg9: memref<1x1x32xf32, #tpu.memory_space<vmem>>, %arg10: memref<1x1x32xf32, #tpu.memory_space<vmem>>, %arg11: memref<1x32x128xbf16, #tpu.memory_space<vmem>>, %arg12: memref<1x1x128xf32, #tpu.memory_space<vmem>>, %arg13: memref<1x128x32xbf16, #tpu.memory_space<vmem>>, %arg14: memref<1x1x32xf32, #tpu.memory_space<vmem>>, %arg15: memref<2x32xf32, #tpu.memory_space<vmem>>, %arg16: memref<2x8x32xf32, #tpu.memory_space<vmem>>) attributes {dimension_semantics = [#tpu.dimension_semantics<parallel>, #tpu.dimension_semantics<arbitrary>], iteration_bounds = array<i64: 1, 2>, scalar_prefetch = 0 : i64, scratch_operands = 1 : i64, tpu.core_type = #tpu.core_type<tc>, window_params = [{transform_indices = @transform_0, window_bounds = array<i64: 2, 8, 32>}, {transform_indices = @transform_1, window_bounds = array<i64: 1, 1, 32>}, {transform_indices = @transform_2, window_bounds = array<i64: 1, 1, 32>}, {transform_indices = @transform_3, window_bounds = array<i64: 1, 32, 96>}, {transform_indices = @transform_4, window_bounds = array<i64: 1, 1, 96>}, {transform_indices = @transform_5, window_bounds = array<i64: 1, 32, 32>}, {transform_indices = @transform_6, window_bounds = array<i64: 1, 1, 32>}, {transform_indices = @transform_7, window_bounds = array<i64: 1, 1, 32>}, {transform_indices = @transform_8, window_bounds = array<i64: 1, 1, 32>}, {transform_indices = @transform_9, window_bounds = array<i64: 1, 32, 128>}, {transform_indices = @transform_10, window_bounds = array<i64: 1, 1, 128>}, {transform_indices = @transform_11, window_bounds = array<i64: 1, 128, 32>}, {transform_indices = @transform_12, window_bounds = array<i64: 1, 1, 32>}, {transform_indices = @transform_13, window_bounds = array<i64: 2, 32>}]} {
    %c0_i32 = arith.constant 0 : i32
    %0 = arith.cmpi eq, %arg1, %c0_i32 : i32
    %1 = arith.extui %0 : i1 to i32
    %c0_i32_0 = arith.constant 0 : i32
    %2 = arith.cmpi ne, %1, %c0_i32_0 : i32
    scf.if %2 {
      %c0_79 = arith.constant 0 : index
      %c0_80 = arith.constant 0 : index
      %c0_81 = arith.constant 0 : index
      %186 = vector.load %arg2[%c0_79, %c0_80, %c0_81] : memref<2x8x32xf32, #tpu.memory_space<vmem>>, vector<2x8x32xf32>
      %c0_82 = arith.constant 0 : index
      %c0_83 = arith.constant 0 : index
      %c0_84 = arith.constant 0 : index
      %187 = vector.load %arg16[%c0_82, %c0_83, %c0_84] : memref<2x8x32xf32, #tpu.memory_space<vmem>>, vector<2x8x32xf32>
      tpu.vector_store %arg16[%c0_82, %c0_83, %c0_84], %186 {strides = array<i32>} : memref<2x8x32xf32, #tpu.memory_space<vmem>>, vector<2x8x32xf32>,
    } else {
    }
    %c0 = arith.constant 0 : index
    %c0_1 = arith.constant 0 : index
    %c0_2 = arith.constant 0 : index
    %3 = vector.load %arg16[%c0, %c0_1, %c0_2] : memref<2x8x32xf32, #tpu.memory_space<vmem>>, vector<2x8x32xf32>
    %c0_3 = arith.constant 0 : index
    %c0_4 = arith.constant 0 : index
    %c0_5 = arith.constant 0 : index
    %4 = vector.load %arg3[%c0_3, %c0_4, %c0_5] : memref<1x1x32xf32, #tpu.memory_space<vmem>>, vector<1x1x32xf32>
    %5 = vector.shape_cast %4 : vector<1x1x32xf32> to vector<1x32xf32>
    %c0_6 = arith.constant 0 : index
    %c0_7 = arith.constant 0 : index
    %c0_8 = arith.constant 0 : index
    %6 = vector.load %arg4[%c0_6, %c0_7, %c0_8] : memref<1x1x32xf32, #tpu.memory_space<vmem>>, vector<1x1x32xf32>
    %7 = vector.shape_cast %6 : vector<1x1x32xf32> to vector<1x32xf32>
    %cst = arith.constant dense<0.000000e+00> : vector<2x8xf32>
    %8 = vector.multi_reduction <add>, %3, %cst [2] : vector<2x8x32xf32> to vector<2x8xf32>
    %9 = vector.shape_cast %8 : vector<2x8xf32> to vector<2x8x1xf32>
    %cst_9 = arith.constant 3.200000e+01 : f32
    %10 = vector.broadcast %cst_9 : f32 to vector<2x8x1xf32>
    %11 = arith.divf %9, %10 : vector<2x8x1xf32>
    %12 = vector.broadcast %11 : vector<2x8x1xf32> to vector<2x8x32xf32>
    %13 = arith.subf %3, %12 : vector<2x8x32xf32>
    %14 = arith.mulf %13, %13 : vector<2x8x32xf32>
    %cst_10 = arith.constant dense<0.000000e+00> : vector<2x8xf32>
    %15 = vector.multi_reduction <add>, %14, %cst_10 [2] : vector<2x8x32xf32> to vector<2x8xf32>
    %16 = vector.shape_cast %15 : vector<2x8xf32> to vector<2x8x1xf32>
    %cst_11 = arith.constant 3.200000e+01 : f32
    %17 = vector.broadcast %cst_11 : f32 to vector<2x8x1xf32>
    %18 = arith.divf %16, %17 : vector<2x8x1xf32>
    %19 = vector.broadcast %11 : vector<2x8x1xf32> to vector<2x8x32xf32>
    %20 = arith.subf %3, %19 : vector<2x8x32xf32>
    %cst_12 = arith.constant 9.99999974E-6 : f32
    %21 = vector.broadcast %cst_12 : f32 to vector<2x8x1xf32>
    %22 = arith.addf %18, %21 : vector<2x8x1xf32>
    %23 = math.rsqrt %22 : vector<2x8x1xf32>
    %24 = vector.broadcast %23 : vector<2x8x1xf32> to vector<2x8x32xf32>
    %25 = arith.mulf %20, %24 : vector<2x8x32xf32>
    %26 = vector.shape_cast %5 : vector<1x32xf32> to vector<1x1x32xf32>
    %27 = vector.broadcast %26 : vector<1x1x32xf32> to vector<2x8x32xf32>
    %28 = arith.mulf %25, %27 : vector<2x8x32xf32>
    %29 = vector.shape_cast %7 : vector<1x32xf32> to vector<1x1x32xf32>
    %30 = vector.broadcast %29 : vector<1x1x32xf32> to vector<2x8x32xf32>
    %31 = arith.addf %28, %30 : vector<2x8x32xf32>
    %32 = vector.shape_cast %31 : vector<2x8x32xf32> to vector<16x32xf32>
    %33 = arith.truncf %32 : vector<16x32xf32> to vector<16x32xbf16>
    %c0_13 = arith.constant 0 : index
    %c0_14 = arith.constant 0 : index
    %c0_15 = arith.constant 0 : index
    %34 = vector.load %arg5[%c0_13, %c0_14, %c0_15] : memref<1x32x96xbf16, #tpu.memory_space<vmem>>, vector<1x32x96xbf16>
    %35 = vector.shape_cast %34 : vector<1x32x96xbf16> to vector<32x96xbf16>
    %cst_16 = arith.constant dense<0.000000e+00> : vector<16x96xf32>
    %36 = tpu.matmul %33, %35, %cst_16 {dimension_numbers = #tpu.dot_dimension_numbers<[1], [0], [0], [1], [0, 0, 1, 1], [], []>} : vector<16x32xbf16>, vector<32x96xbf16>, vector<16x96xf32> -> vector<16x96xf32>
    %c0_17 = arith.constant 0 : index
    %c0_18 = arith.constant 0 : index
    %c0_19 = arith.constant 0 : index
    %37 = vector.load %arg6[%c0_17, %c0_18, %c0_19] : memref<1x1x96xf32, #tpu.memory_space<vmem>>, vector<1x1x96xf32>
    %38 = vector.shape_cast %37 : vector<1x1x96xf32> to vector<1x96xf32>
    %39 = vector.broadcast %38 : vector<1x96xf32> to vector<16x96xf32>
    %40 = arith.addf %36, %39 : vector<16x96xf32>
    %41 = vector.shape_cast %40 : vector<16x96xf32> to vector<2x8x96xf32>
    %42 = arith.truncf %41 : vector<2x8x96xf32> to vector<2x8x96xbf16>
    %43 = vector.extract_strided_slice %42 {offsets = [0, 0, 0], sizes = [2, 8, 8], strides = [1, 1, 1]} : vector<2x8x96xbf16> to vector<2x8x8xbf16>
    %44 = vector.extract_strided_slice %42 {offsets = [0, 0, 32], sizes = [2, 8, 8], strides = [1, 1, 1]} : vector<2x8x96xbf16> to vector<2x8x8xbf16>
    %45 = vector.extract_strided_slice %42 {offsets = [0, 0, 64], sizes = [2, 8, 8], strides = [1, 1, 1]} : vector<2x8x96xbf16> to vector<2x8x8xbf16>
    "tpu.trace_start"() <{level = 10 : i32, message = "bqd,bkd->bqk"}> : () -> ()
    %cst_20 = arith.constant dense<0.000000e+00> : vector<2x8x8xf32>
    %46 = tpu.matmul %43, %44, %cst_20 {dimension_numbers = #tpu.dot_dimension_numbers<[2], [2], [1], [1], [0, 0, 0, 1, 1, 1], [0], [0]>} : vector<2x8x8xbf16>, vector<2x8x8xbf16>, vector<2x8x8xf32> -> vector<2x8x8xf32>
    "tpu.trace_stop"() : () -> ()
    %cst_21 = arith.constant 0.353553385 : f32
    %47 = vector.broadcast %cst_21 : f32 to vector<2x8x8xf32>
    %48 = arith.mulf %46, %47 : vector<2x8x8xf32>
    %cst_22 = arith.constant dense<0xFF800000> : vector<2x8xf32>
    %49 = vector.multi_reduction <maximumf>, %48, %cst_22 [2] : vector<2x8x8xf32> to vector<2x8xf32>
    %50 = vector.shape_cast %49 : vector<2x8xf32> to vector<2x8x1xf32>
    %51 = vector.broadcast %50 : vector<2x8x1xf32> to vector<2x8x8xf32>
    %52 = arith.subf %48, %51 : vector<2x8x8xf32>
    %53 = math.exp %52 : vector<2x8x8xf32>
    %cst_23 = arith.constant dense<0.000000e+00> : vector<2x8xf32>
    %54 = vector.multi_reduction <add>, %53, %cst_23 [2] : vector<2x8x8xf32> to vector<2x8xf32>
    %55 = vector.shape_cast %54 : vector<2x8xf32> to vector<2x8x1xf32>
    %56 = tpu.reciprocal %55 {approx = true} : vector<2x8x1xf32> -> vector<2x8x1xf32>
    %57 = vector.broadcast %56 : vector<2x8x1xf32> to vector<2x8x8xf32>
    %58 = arith.mulf %53, %57 : vector<2x8x8xf32>
    %59 = arith.truncf %58 : vector<2x8x8xf32> to vector<2x8x8xbf16>
    "tpu.trace_start"() <{level = 10 : i32, message = "bqk,bkd->bqd"}> : () -> ()
    %cst_24 = arith.constant dense<0.000000e+00> : vector<2x8x8xf32>
    %60 = tpu.matmul %59, %45, %cst_24 {dimension_numbers = #tpu.dot_dimension_numbers<[2], [1], [1], [2], [0, 0, 0, 1, 1, 2], [0], [0]>} : vector<2x8x8xbf16>, vector<2x8x8xbf16>, vector<2x8x8xf32> -> vector<2x8x8xf32>
    "tpu.trace_stop"() : () -> ()
    %61 = vector.extract_strided_slice %42 {offsets = [0, 0, 8], sizes = [2, 8, 8], strides = [1, 1, 1]} : vector<2x8x96xbf16> to vector<2x8x8xbf16>
    %62 = vector.extract_strided_slice %42 {offsets = [0, 0, 40], sizes = [2, 8, 8], strides = [1, 1, 1]} : vector<2x8x96xbf16> to vector<2x8x8xbf16>
    %63 = vector.extract_strided_slice %42 {offsets = [0, 0, 72], sizes = [2, 8, 8], strides = [1, 1, 1]} : vector<2x8x96xbf16> to vector<2x8x8xbf16>
    "tpu.trace_start"() <{level = 10 : i32, message = "bqd,bkd->bqk"}> : () -> ()
    %cst_25 = arith.constant dense<0.000000e+00> : vector<2x8x8xf32>
    %64 = tpu.matmul %61, %62, %cst_25 {dimension_numbers = #tpu.dot_dimension_numbers<[2], [2], [1], [1], [0, 0, 0, 1, 1, 1], [0], [0]>} : vector<2x8x8xbf16>, vector<2x8x8xbf16>, vector<2x8x8xf32> -> vector<2x8x8xf32>
    "tpu.trace_stop"() : () -> ()
    %cst_26 = arith.constant 0.353553385 : f32
    %65 = vector.broadcast %cst_26 : f32 to vector<2x8x8xf32>
    %66 = arith.mulf %64, %65 : vector<2x8x8xf32>
    %cst_27 = arith.constant dense<0xFF800000> : vector<2x8xf32>
    %67 = vector.multi_reduction <maximumf>, %66, %cst_27 [2] : vector<2x8x8xf32> to vector<2x8xf32>
    %68 = vector.shape_cast %67 : vector<2x8xf32> to vector<2x8x1xf32>
    %69 = vector.broadcast %68 : vector<2x8x1xf32> to vector<2x8x8xf32>
    %70 = arith.subf %66, %69 : vector<2x8x8xf32>
    %71 = math.exp %70 : vector<2x8x8xf32>
    %cst_28 = arith.constant dense<0.000000e+00> : vector<2x8xf32>
    %72 = vector.multi_reduction <add>, %71, %cst_28 [2] : vector<2x8x8xf32> to vector<2x8xf32>
    %73 = vector.shape_cast %72 : vector<2x8xf32> to vector<2x8x1xf32>
    %74 = tpu.reciprocal %73 {approx = true} : vector<2x8x1xf32> -> vector<2x8x1xf32>
    %75 = vector.broadcast %74 : vector<2x8x1xf32> to vector<2x8x8xf32>
    %76 = arith.mulf %71, %75 : vector<2x8x8xf32>
    %77 = arith.truncf %76 : vector<2x8x8xf32> to vector<2x8x8xbf16>
    "tpu.trace_start"() <{level = 10 : i32, message = "bqk,bkd->bqd"}> : () -> ()
    %cst_29 = arith.constant dense<0.000000e+00> : vector<2x8x8xf32>
    %78 = tpu.matmul %77, %63, %cst_29 {dimension_numbers = #tpu.dot_dimension_numbers<[2], [1], [1], [2], [0, 0, 0, 1, 1, 2], [0], [0]>} : vector<2x8x8xbf16>, vector<2x8x8xbf16>, vector<2x8x8xf32> -> vector<2x8x8xf32>
    "tpu.trace_stop"() : () -> ()
    %79 = vector.extract_strided_slice %42 {offsets = [0, 0, 16], sizes = [2, 8, 8], strides = [1, 1, 1]} : vector<2x8x96xbf16> to vector<2x8x8xbf16>
    %80 = vector.extract_strided_slice %42 {offsets = [0, 0, 48], sizes = [2, 8, 8], strides = [1, 1, 1]} : vector<2x8x96xbf16> to vector<2x8x8xbf16>
    %81 = vector.extract_strided_slice %42 {offsets = [0, 0, 80], sizes = [2, 8, 8], strides = [1, 1, 1]} : vector<2x8x96xbf16> to vector<2x8x8xbf16>
    "tpu.trace_start"() <{level = 10 : i32, message = "bqd,bkd->bqk"}> : () -> ()
    %cst_30 = arith.constant dense<0.000000e+00> : vector<2x8x8xf32>
    %82 = tpu.matmul %79, %80, %cst_30 {dimension_numbers = #tpu.dot_dimension_numbers<[2], [2], [1], [1], [0, 0, 0, 1, 1, 1], [0], [0]>} : vector<2x8x8xbf16>, vector<2x8x8xbf16>, vector<2x8x8xf32> -> vector<2x8x8xf32>
    "tpu.trace_stop"() : () -> ()
    %cst_31 = arith.constant 0.353553385 : f32
    %83 = vector.broadcast %cst_31 : f32 to vector<2x8x8xf32>
    %84 = arith.mulf %82, %83 : vector<2x8x8xf32>
    %cst_32 = arith.constant dense<0xFF800000> : vector<2x8xf32>
    %85 = vector.multi_reduction <maximumf>, %84, %cst_32 [2] : vector<2x8x8xf32> to vector<2x8xf32>
    %86 = vector.shape_cast %85 : vector<2x8xf32> to vector<2x8x1xf32>
    %87 = vector.broadcast %86 : vector<2x8x1xf32> to vector<2x8x8xf32>
    %88 = arith.subf %84, %87 : vector<2x8x8xf32>
    %89 = math.exp %88 : vector<2x8x8xf32>
    %cst_33 = arith.constant dense<0.000000e+00> : vector<2x8xf32>
    %90 = vector.multi_reduction <add>, %89, %cst_33 [2] : vector<2x8x8xf32> to vector<2x8xf32>
    %91 = vector.shape_cast %90 : vector<2x8xf32> to vector<2x8x1xf32>
    %92 = tpu.reciprocal %91 {approx = true} : vector<2x8x1xf32> -> vector<2x8x1xf32>
    %93 = vector.broadcast %92 : vector<2x8x1xf32> to vector<2x8x8xf32>
    %94 = arith.mulf %89, %93 : vector<2x8x8xf32>
    %95 = arith.truncf %94 : vector<2x8x8xf32> to vector<2x8x8xbf16>
    "tpu.trace_start"() <{level = 10 : i32, message = "bqk,bkd->bqd"}> : () -> ()
    %cst_34 = arith.constant dense<0.000000e+00> : vector<2x8x8xf32>
    %96 = tpu.matmul %95, %81, %cst_34 {dimension_numbers = #tpu.dot_dimension_numbers<[2], [1], [1], [2], [0, 0, 0, 1, 1, 2], [0], [0]>} : vector<2x8x8xbf16>, vector<2x8x8xbf16>, vector<2x8x8xf32> -> vector<2x8x8xf32>
    "tpu.trace_stop"() : () -> ()
    %97 = vector.extract_strided_slice %42 {offsets = [0, 0, 24], sizes = [2, 8, 8], strides = [1, 1, 1]} : vector<2x8x96xbf16> to vector<2x8x8xbf16>
    %98 = vector.extract_strided_slice %42 {offsets = [0, 0, 56], sizes = [2, 8, 8], strides = [1, 1, 1]} : vector<2x8x96xbf16> to vector<2x8x8xbf16>
    %99 = vector.extract_strided_slice %42 {offsets = [0, 0, 88], sizes = [2, 8, 8], strides = [1, 1, 1]} : vector<2x8x96xbf16> to vector<2x8x8xbf16>
    "tpu.trace_start"() <{level = 10 : i32, message = "bqd,bkd->bqk"}> : () -> ()
    %cst_35 = arith.constant dense<0.000000e+00> : vector<2x8x8xf32>
    %100 = tpu.matmul %97, %98, %cst_35 {dimension_numbers = #tpu.dot_dimension_numbers<[2], [2], [1], [1], [0, 0, 0, 1, 1, 1], [0], [0]>} : vector<2x8x8xbf16>, vector<2x8x8xbf16>, vector<2x8x8xf32> -> vector<2x8x8xf32>
    "tpu.trace_stop"() : () -> ()
    %cst_36 = arith.constant 0.353553385 : f32
    %101 = vector.broadcast %cst_36 : f32 to vector<2x8x8xf32>
    %102 = arith.mulf %100, %101 : vector<2x8x8xf32>
    %cst_37 = arith.constant dense<0xFF800000> : vector<2x8xf32>
    %103 = vector.multi_reduction <maximumf>, %102, %cst_37 [2] : vector<2x8x8xf32> to vector<2x8xf32>
    %104 = vector.shape_cast %103 : vector<2x8xf32> to vector<2x8x1xf32>
    %105 = vector.broadcast %104 : vector<2x8x1xf32> to vector<2x8x8xf32>
    %106 = arith.subf %102, %105 : vector<2x8x8xf32>
    %107 = math.exp %106 : vector<2x8x8xf32>
    %cst_38 = arith.constant dense<0.000000e+00> : vector<2x8xf32>
    %108 = vector.multi_reduction <add>, %107, %cst_38 [2] : vector<2x8x8xf32> to vector<2x8xf32>
    %109 = vector.shape_cast %108 : vector<2x8xf32> to vector<2x8x1xf32>
    %110 = tpu.reciprocal %109 {approx = true} : vector<2x8x1xf32> -> vector<2x8x1xf32>
    %111 = vector.broadcast %110 : vector<2x8x1xf32> to vector<2x8x8xf32>
    %112 = arith.mulf %107, %111 : vector<2x8x8xf32>
    %113 = arith.truncf %112 : vector<2x8x8xf32> to vector<2x8x8xbf16>
    "tpu.trace_start"() <{level = 10 : i32, message = "bqk,bkd->bqd"}> : () -> ()
    %cst_39 = arith.constant dense<0.000000e+00> : vector<2x8x8xf32>
    %114 = tpu.matmul %113, %99, %cst_39 {dimension_numbers = #tpu.dot_dimension_numbers<[2], [1], [1], [2], [0, 0, 0, 1, 1, 2], [0], [0]>} : vector<2x8x8xbf16>, vector<2x8x8xbf16>, vector<2x8x8xf32> -> vector<2x8x8xf32>
    "tpu.trace_stop"() : () -> ()
    %115 = tpu.concatenate %60, %78, %96, %114 in 2 : vector<2x8x8xf32>, vector<2x8x8xf32>, vector<2x8x8xf32>, vector<2x8x8xf32> -> vector<2x8x32xf32>
    %116 = vector.shape_cast %115 : vector<2x8x32xf32> to vector<16x32xf32>
    %117 = arith.truncf %116 : vector<16x32xf32> to vector<16x32xbf16>
    %c0_40 = arith.constant 0 : index
    %c0_41 = arith.constant 0 : index
    %c0_42 = arith.constant 0 : index
    %118 = vector.load %arg7[%c0_40, %c0_41, %c0_42] : memref<1x32x32xbf16, #tpu.memory_space<vmem>>, vector<1x32x32xbf16>
    %119 = vector.shape_cast %118 : vector<1x32x32xbf16> to vector<32x32xbf16>
    %cst_43 = arith.constant dense<0.000000e+00> : vector<16x32xf32>
    %120 = tpu.matmul %117, %119, %cst_43 {dimension_numbers = #tpu.dot_dimension_numbers<[1], [0], [0], [1], [0, 0, 1, 1], [], []>} : vector<16x32xbf16>, vector<32x32xbf16>, vector<16x32xf32> -> vector<16x32xf32>
    %c0_44 = arith.constant 0 : index
    %c0_45 = arith.constant 0 : index
    %c0_46 = arith.constant 0 : index
    %121 = vector.load %arg8[%c0_44, %c0_45, %c0_46] : memref<1x1x32xf32, #tpu.memory_space<vmem>>, vector<1x1x32xf32>
    %122 = vector.shape_cast %121 : vector<1x1x32xf32> to vector<1x32xf32>
    %123 = vector.broadcast %122 : vector<1x32xf32> to vector<16x32xf32>
    %124 = arith.addf %120, %123 : vector<16x32xf32>
    %125 = vector.shape_cast %124 : vector<16x32xf32> to vector<2x8x32xf32>
    %126 = arith.addf %3, %125 : vector<2x8x32xf32>
    %c0_47 = arith.constant 0 : index
    %c0_48 = arith.constant 0 : index
    %c0_49 = arith.constant 0 : index
    %127 = vector.load %arg9[%c0_47, %c0_48, %c0_49] : memref<1x1x32xf32, #tpu.memory_space<vmem>>, vector<1x1x32xf32>
    %128 = vector.shape_cast %127 : vector<1x1x32xf32> to vector<1x32xf32>
    %c0_50 = arith.constant 0 : index
    %c0_51 = arith.constant 0 : index
    %c0_52 = arith.constant 0 : index
    %129 = vector.load %arg10[%c0_50, %c0_51, %c0_52] : memref<1x1x32xf32, #tpu.memory_space<vmem>>, vector<1x1x32xf32>
    %130 = vector.shape_cast %129 : vector<1x1x32xf32> to vector<1x32xf32>
    %cst_53 = arith.constant dense<0.000000e+00> : vector<2x8xf32>
    %131 = vector.multi_reduction <add>, %126, %cst_53 [2] : vector<2x8x32xf32> to vector<2x8xf32>
    %132 = vector.shape_cast %131 : vector<2x8xf32> to vector<2x8x1xf32>
    %cst_54 = arith.constant 3.200000e+01 : f32
    %133 = vector.broadcast %cst_54 : f32 to vector<2x8x1xf32>
    %134 = arith.divf %132, %133 : vector<2x8x1xf32>
    %135 = vector.broadcast %134 : vector<2x8x1xf32> to vector<2x8x32xf32>
    %136 = arith.subf %126, %135 : vector<2x8x32xf32>
    %137 = arith.mulf %136, %136 : vector<2x8x32xf32>
    %cst_55 = arith.constant dense<0.000000e+00> : vector<2x8xf32>
    %138 = vector.multi_reduction <add>, %137, %cst_55 [2] : vector<2x8x32xf32> to vector<2x8xf32>
    %139 = vector.shape_cast %138 : vector<2x8xf32> to vector<2x8x1xf32>
    %cst_56 = arith.constant 3.200000e+01 : f32
    %140 = vector.broadcast %cst_56 : f32 to vector<2x8x1xf32>
    %141 = arith.divf %139, %140 : vector<2x8x1xf32>
    %142 = vector.broadcast %134 : vector<2x8x1xf32> to vector<2x8x32xf32>
    %143 = arith.subf %126, %142 : vector<2x8x32xf32>
    %cst_57 = arith.constant 9.99999974E-6 : f32
    %144 = vector.broadcast %cst_57 : f32 to vector<2x8x1xf32>
    %145 = arith.addf %141, %144 : vector<2x8x1xf32>
    %146 = math.rsqrt %145 : vector<2x8x1xf32>
    %147 = vector.broadcast %146 : vector<2x8x1xf32> to vector<2x8x32xf32>
    %148 = arith.mulf %143, %147 : vector<2x8x32xf32>
    %149 = vector.shape_cast %128 : vector<1x32xf32> to vector<1x1x32xf32>
    %150 = vector.broadcast %149 : vector<1x1x32xf32> to vector<2x8x32xf32>
    %151 = arith.mulf %148, %150 : vector<2x8x32xf32>
    %152 = vector.shape_cast %130 : vector<1x32xf32> to vector<1x1x32xf32>
    %153 = vector.broadcast %152 : vector<1x1x32xf32> to vector<2x8x32xf32>
    %154 = arith.addf %151, %153 : vector<2x8x32xf32>
    %155 = vector.shape_cast %154 : vector<2x8x32xf32> to vector<16x32xf32>
    %156 = arith.truncf %155 : vector<16x32xf32> to vector<16x32xbf16>
    %c0_58 = arith.constant 0 : index
    %c0_59 = arith.constant 0 : index
    %c0_60 = arith.constant 0 : index
    %157 = vector.load %arg11[%c0_58, %c0_59, %c0_60] : memref<1x32x128xbf16, #tpu.memory_space<vmem>>, vector<1x32x128xbf16>
    %158 = vector.shape_cast %157 : vector<1x32x128xbf16> to vector<32x128xbf16>
    %cst_61 = arith.constant dense<0.000000e+00> : vector<16x128xf32>
    %159 = tpu.matmul %156, %158, %cst_61 {dimension_numbers = #tpu.dot_dimension_numbers<[1], [0], [0], [1], [0, 0, 1, 1], [], []>} : vector<16x32xbf16>, vector<32x128xbf16>, vector<16x128xf32> -> vector<16x128xf32>
    %c0_62 = arith.constant 0 : index
    %c0_63 = arith.constant 0 : index
    %c0_64 = arith.constant 0 : index
    %160 = vector.load %arg12[%c0_62, %c0_63, %c0_64] : memref<1x1x128xf32, #tpu.memory_space<vmem>>, vector<1x1x128xf32>
    %161 = vector.shape_cast %160 : vector<1x1x128xf32> to vector<1x128xf32>
    %162 = vector.broadcast %161 : vector<1x128xf32> to vector<16x128xf32>
    %163 = arith.addf %159, %162 : vector<16x128xf32>
    %cst_65 = arith.constant 5.000000e-01 : f32
    %164 = vector.broadcast %cst_65 : f32 to vector<16x128xf32>
    %165 = arith.mulf %164, %163 : vector<16x128xf32>
    %cst_66 = arith.constant 0.707106769 : f32
    %166 = vector.broadcast %cst_66 : f32 to vector<16x128xf32>
    %167 = arith.mulf %163, %166 : vector<16x128xf32>
    %168 = math.erf %167 : vector<16x128xf32>
    %cst_67 = arith.constant 1.000000e+00 : f32
    %169 = vector.broadcast %cst_67 : f32 to vector<16x128xf32>
    %170 = arith.addf %169, %168 : vector<16x128xf32>
    %171 = arith.mulf %165, %170 : vector<16x128xf32>
    %172 = arith.truncf %171 : vector<16x128xf32> to vector<16x128xbf16>
    %c0_68 = arith.constant 0 : index
    %c0_69 = arith.constant 0 : index
    %c0_70 = arith.constant 0 : index
    %173 = vector.load %arg13[%c0_68, %c0_69, %c0_70] : memref<1x128x32xbf16, #tpu.memory_space<vmem>>, vector<1x128x32xbf16>
    %174 = vector.shape_cast %173 : vector<1x128x32xbf16> to vector<128x32xbf16>
    %cst_71 = arith.constant dense<0.000000e+00> : vector<16x32xf32>
    %175 = tpu.matmul %172, %174, %cst_71 {dimension_numbers = #tpu.dot_dimension_numbers<[1], [0], [0], [1], [0, 0, 1, 1], [], []>} : vector<16x128xbf16>, vector<128x32xbf16>, vector<16x32xf32> -> vector<16x32xf32>
    %c0_72 = arith.constant 0 : index
    %c0_73 = arith.constant 0 : index
    %c0_74 = arith.constant 0 : index
    %176 = vector.load %arg14[%c0_72, %c0_73, %c0_74] : memref<1x1x32xf32, #tpu.memory_space<vmem>>, vector<1x1x32xf32>
    %177 = vector.shape_cast %176 : vector<1x1x32xf32> to vector<1x32xf32>
    %178 = vector.broadcast %177 : vector<1x32xf32> to vector<16x32xf32>
    %179 = arith.addf %175, %178 : vector<16x32xf32>
    %180 = vector.shape_cast %179 : vector<16x32xf32> to vector<2x8x32xf32>
    %181 = arith.addf %126, %180 : vector<2x8x32xf32>
    %c0_75 = arith.constant 0 : index
    %c0_76 = arith.constant 0 : index
    %c0_77 = arith.constant 0 : index
    %182 = vector.load %arg16[%c0_75, %c0_76, %c0_77] : memref<2x8x32xf32, #tpu.memory_space<vmem>>, vector<2x8x32xf32>
    tpu.vector_store %arg16[%c0_75, %c0_76, %c0_77], %181 {strides = array<i32>} : memref<2x8x32xf32, #tpu.memory_space<vmem>>, vector<2x8x32xf32>,
    %c1_i32 = arith.constant 1 : i32
    %183 = arith.cmpi eq, %arg1, %c1_i32 : i32
    %184 = arith.extui %183 : i1 to i32
    %c0_i32_78 = arith.constant 0 : i32
    %185 = arith.cmpi ne, %184, %c0_i32_78 : i32
    scf.if %185 {
      %186 = vector.extract_strided_slice %181 {offsets = [0, 0, 0], sizes = [2, 1, 32], strides = [1, 1, 1]} : vector<2x8x32xf32> to vector<2x1x32xf32>
      %187 = vector.shape_cast %186 : vector<2x1x32xf32> to vector<2x32xf32>
      %c0_79 = arith.constant 0 : index
      %c0_80 = arith.constant 0 : index
      %188 = vector.load %arg15[%c0_79, %c0_80] : memref<2x32xf32, #tpu.memory_space<vmem>>, vector<2x32xf32>
      tpu.vector_store %arg15[%c0_79, %c0_80], %187 {strides = array<i32>} : memref<2x32xf32, #tpu.memory_space<vmem>>, vector<2x32xf32>,
    } else {
    }
    return
  }
  func.func @transform_0(%arg0: i32, %arg1: i32) -> (i32, i32, i32) {
    %c0_i32 = arith.constant 0 : i32
    %c0_i32_0 = arith.constant 0 : i32
    %c0_i32_1 = arith.constant 0 : i32
    return %arg0, %c0_i32, %c0_i32_0 : i32, i32, i32
  }
  func.func @transform_1(%arg0: i32, %arg1: i32) -> (i32, i32, i32) {
    %c0_i32 = arith.constant 0 : i32
    %c0_i32_0 = arith.constant 0 : i32
    %c0_i32_1 = arith.constant 0 : i32
    return %arg1, %c0_i32, %c0_i32_0 : i32, i32, i32
  }
  func.func @transform_2(%arg0: i32, %arg1: i32) -> (i32, i32, i32) {
    %c0_i32 = arith.constant 0 : i32
    %c0_i32_0 = arith.constant 0 : i32
    %c0_i32_1 = arith.constant 0 : i32
    return %arg1, %c0_i32, %c0_i32_0 : i32, i32, i32
  }
  func.func @transform_3(%arg0: i32, %arg1: i32) -> (i32, i32, i32) {
    %c0_i32 = arith.constant 0 : i32
    %c0_i32_0 = arith.constant 0 : i32
    %c0_i32_1 = arith.constant 0 : i32
    return %arg1, %c0_i32, %c0_i32_0 : i32, i32, i32
  }
  func.func @transform_4(%arg0: i32, %arg1: i32) -> (i32, i32, i32) {
    %c0_i32 = arith.constant 0 : i32
    %c0_i32_0 = arith.constant 0 : i32
    %c0_i32_1 = arith.constant 0 : i32
    return %arg1, %c0_i32, %c0_i32_0 : i32, i32, i32
  }
  func.func @transform_5(%arg0: i32, %arg1: i32) -> (i32, i32, i32) {
    %c0_i32 = arith.constant 0 : i32
    %c0_i32_0 = arith.constant 0 : i32
    %c0_i32_1 = arith.constant 0 : i32
    return %arg1, %c0_i32, %c0_i32_0 : i32, i32, i32
  }
  func.func @transform_6(%arg0: i32, %arg1: i32) -> (i32, i32, i32) {
    %c0_i32 = arith.constant 0 : i32
    %c0_i32_0 = arith.constant 0 : i32
    %c0_i32_1 = arith.constant 0 : i32
    return %arg1, %c0_i32, %c0_i32_0 : i32, i32, i32
  }
  func.func @transform_7(%arg0: i32, %arg1: i32) -> (i32, i32, i32) {
    %c0_i32 = arith.constant 0 : i32
    %c0_i32_0 = arith.constant 0 : i32
    %c0_i32_1 = arith.constant 0 : i32
    return %arg1, %c0_i32, %c0_i32_0 : i32, i32, i32
  }
  func.func @transform_8(%arg0: i32, %arg1: i32) -> (i32, i32, i32) {
    %c0_i32 = arith.constant 0 : i32
    %c0_i32_0 = arith.constant 0 : i32
    %c0_i32_1 = arith.constant 0 : i32
    return %arg1, %c0_i32, %c0_i32_0 : i32, i32, i32
  }
  func.func @transform_9(%arg0: i32, %arg1: i32) -> (i32, i32, i32) {
    %c0_i32 = arith.constant 0 : i32
    %c0_i32_0 = arith.constant 0 : i32
    %c0_i32_1 = arith.constant 0 : i32
    return %arg1, %c0_i32, %c0_i32_0 : i32, i32, i32
  }
  func.func @transform_10(%arg0: i32, %arg1: i32) -> (i32, i32, i32) {
    %c0_i32 = arith.constant 0 : i32
    %c0_i32_0 = arith.constant 0 : i32
    %c0_i32_1 = arith.constant 0 : i32
    return %arg1, %c0_i32, %c0_i32_0 : i32, i32, i32
  }
  func.func @transform_11(%arg0: i32, %arg1: i32) -> (i32, i32, i32) {
    %c0_i32 = arith.constant 0 : i32
    %c0_i32_0 = arith.constant 0 : i32
    %c0_i32_1 = arith.constant 0 : i32
    return %arg1, %c0_i32, %c0_i32_0 : i32, i32, i32
  }
  func.func @transform_12(%arg0: i32, %arg1: i32) -> (i32, i32, i32) {
    %c0_i32 = arith.constant 0 : i32
    %c0_i32_0 = arith.constant 0 : i32
    %c0_i32_1 = arith.constant 0 : i32
    return %arg1, %c0_i32, %c0_i32_0 : i32, i32, i32
  }
  func.func @transform_13(%arg0: i32, %arg1: i32) -> (i32, i32) {
    %c0_i32 = arith.constant 0 : i32
    %c0_i32_0 = arith.constant 0 : i32
    return %arg0, %c0_i32 : i32, i32
  }
}

</mosaic_0001>

<bundles_post_ra>
// kernel: tpu_custom_call.1
= control target key start
LH: loop header
LB: loop body
LE: loop exit
PB: predicated region body
PF: predicated region fallthrough
CT: control target
= control target key end

     0   :  { %s4428_s0 = inlined_call_operand.hbm [shape: f32[2,8,32], index: 0, kind: input, shape index: {}]   ;;  %s4429_s1 = inlined_call_operand.hbm [shape: f32[2,1,32], index: 1, kind: input, shape index: {}]   ;;  %s4430_s2 = inlined_call_operand.hbm [shape: f32[2,1,32], index: 2, kind: input, shape index: {}]   ;;  %s4431_s3 = inlined_call_operand.hbm [shape: bf16[2,32,96], index: 3, kind: input, shape index: {}]   ;;  %s4432_s4 = inlined_call_operand.hbm [shape: f32[2,1,96], index: 4, kind: input, shape index: {}]   ;;  %s4433_s5 = inlined_call_operand.hbm [shape: bf16[2,32,32], index: 5, kind: input, shape index: {}]   ;;  %s4434_s6 = inlined_call_operand.hbm [shape: f32[2,1,32], index: 6, kind: input, shape index: {}]   ;;  %s4435_s7 = inlined_call_operand.hbm [shape: f32[2,1,32], index: 7, kind: input, shape index: {}]   ;;  %s4436_s8 = inlined_call_operand.hbm [shape: f32[2,1,32], index: 8, kind: input, shape index: {}]   ;;  %s4437_s9 = inlined_call_operand.hbm [shape: bf16[2,32,128], index: 9, kind: input, shape index: {}]   ;;  %s4438_s10 = inlined_call_operand.hbm [shape: f32[2,1,128], index: 10, kind: input, shape index: {}]   ;;  %s4439_s11 = inlined_call_operand.hbm [shape: bf16[2,128,32], index: 11, kind: input, shape index: {}]   ;;  %s4440_s12 = inlined_call_operand.hbm [shape: f32[2,1,32], index: 12, kind: input, shape index: {}]   ;;  %s4441_s13 = inlined_call_operand.hbm [shape: f32[2,32], index: 13, kind: output, shape index: {}]  }
   0x1   :  { %4463 = sst [smem:[#allocation37_spill]] %s4428_s0 }
   0x2   :  { %4464 = sst [smem:[#allocation38_spill]] %s4429_s1 }
   0x3   :  { %4465 = sst [smem:[#allocation39_spill]] %s4431_s3 }
   0x4   :  { %4466 = sst [smem:[#allocation40_spill]] %s4433_s5 }
   0x5   :  { %4467 = sst [smem:[#allocation41_spill]] %s4435_s7 }
   0x6   :  { %4468 = sst [smem:[#allocation42_spill]] %s4436_s8 }
   0x7   :  { %4469 = sst [smem:[#allocation43_spill]] %s4438_s10 }
   0x8   :  { %4470 = sst [smem:[#allocation44_spill]] %s4440_s12 }
   0x9   :  { %4471 = sst [smem:[#allocation45_spill]] %s4441_s13 }
   0xa   :  { %18 = vsyncpa [#allocation4], 0 }
   0xb   :  { %19 = vsyncpa [#allocation7], 0 }
   0xc   :  { %21 = vsyncpa [#allocation7 + $0x1], 0 }
   0xd   :  { %22 = vsyncpa [#allocation10], 0 }
   0xe   :  { %24 = vsyncpa [#allocation10 + $0x1], 0 }
   0xf   :  { %25 = vsyncpa [#allocation13], 0 }
  0x10   :  { %27 = vsyncpa [#allocation13 + $0x1], 0 }
  0x11   :  { %28 = vsyncpa [#allocation16], 0 }
  0x12   :  { %30 = vsyncpa [#allocation16 + $0x1], 0 }
  0x13   :  { %31 = vsyncpa [#allocation19], 0 }
  0x14   :  { %33 = vsyncpa [#allocation19 + $0x1], 0 }
  0x15   :  { %34 = vsyncpa [#allocation22], 0 }
  0x16   :  { %36 = vsyncpa [#allocation22 + $0x1], 0 }
  0x17   :  { %37 = vsyncpa [#allocation5], 0  ;;  %s3616_s25 = smov 0   ;;  %s3618_s26 = smov 0  }
  0x18   :  { %s3620_s27 = smov 0   ;;  %s3622_s28 = smov 0  }
  0x19   :  { %s3624_s29 = smov 0   ;;  %s3626_s30 = smov 0  }
  0x1a LB: > { %4472 = sst [smem:[#allocation33_spill]] %s3498_s27  ;;  %s52_s14 = sadd.s32 1, %s3506_s29  ;;  %s3510_s30 = sphi %s3626_s30, %s43_s30   ;;  %s3506_s29 = sphi %s3624_s29, %s4521_s29   ;;  %s3502_s28 = sphi %s3622_s28, %s4520_s28   ;;  %s3498_s27 = sphi %s3620_s27, %s4516_s27   ;;  %s3494_s26 = sphi %s3618_s26, %s4519_s26   ;;  %s3490_s25 = sphi %s3616_s25, %s4518_s25  }
  0x1b   : > { %4473 = sst [smem:[#allocation34_spill]] %s3502_s28  ;;  %s88_s15 = sadd.s32 1, %s3498_s27 }
  0x1c   : > { %p53_p0 = scmp.ge.s32.totalorder %s52_s14, 2  ;;  %p95_p1 = scmp.ne.s32.totalorder %s3498_s27, %s3494_s26 }
  0x1d   : > { %p96_p2 = scmp.eq.s32.totalorder %s3510_s30, 0  ;;  %p2871_p4 = scmp.lt.s32.totalorder %s3510_s30, 2 }
  0x1e   : > { %s4523_s14 = smov (%p53_p0, %s52_s14), 0  ;;  %s3657_s17 = sand.u32 1, %s3510_s30  }
  0x1f   : > { %4474 = sst [smem:[#allocation35_spill]] %s4523_s14  ;;  %p97_p3 = por %p96_p2, %p95_p1 }
  0x20   : > { %s85_s16 = ssub.s32 %s3506_s29, %s4523_s14  ;;  %s3660_s18 = sand.u32 1, %s3498_s27  }
  0x21   : > { %p86_p5 = scmp.eq.s32.totalorder %s85_s16, 0  ;;  %s3663_s19 = sshll.u32 %s3506_s29, 4 }
  0x22   : > { %s4476_s1 = sld [smem:[#allocation38_spill]]  ;;  %s456_s24 = scalar_lea.vmem [#allocation6], %s3660_s18 }
  0x23   : > { %s3666_s20 = scalar_select %p86_p5, %s3498_s27, %s88_s15  }
  0x24   : > { %s463_s16 = sshll.u32 %s456_s24, 4  ;;  %p3675_p6 = pnand %p2871_p4, %p97_p3  ;;  %s3679_s16 = int_to_ptr.vmem [resolvable:$true] %s463_s16 }
  0x25   : > { %4475 = sst [smem:[#allocation36_spill]] %s3666_s20  ;;  %s3682_s15 = sshll.u32 %s3660_s18, 4 }
  0x26   : > { %s4477_s14 = scalar_select %p3675_p6, 1, 0 }
  0x27   : > { %p3689_p8 = pneg %p3675_p6 }
  0x28   : > { %s3672_s23 = scalar_lea.hbm %s4476_s1, %s3663_s19  ;;  %s3023_s13 = scalar_lea.hbm %s4476_s1, 32 }
  0x29   : > { %s3018_s27 = scalar_lea.hbm %s3672_s23, 16  ;;  %p3024_p11 = scmp.lt.u32.totalorder %s3672_s23, %s4476_s1 }
  0x2a   : > { %p3019_p7 = scmp.ne.s32.totalorder %s3672_s23, %s3018_s27  ;;  %p3025_p12 = scmp.lt.u32.totalorder %s3023_s13, %s3018_s27 }
  0x2b   : > { %s4478_s21 = scalar_select %p3689_p8, 1, 0 }
  0x2c   : > { %p3021_p9 = pnand %p3689_p8, %p3019_p7  ;;  %p3026_p13 = por %p3025_p12, %p3024_p11 }
  0x2d   : > { %p3027_p0 = scmp.lt.u32.totalorder %s3018_s27, %s3672_s23 }
  0x2e   : > { %p3022_p10 = pneg %p3021_p9 }
  0x2f   : > { %p3028_p1 = por %p3027_p0, %p3026_p13 }
  0x31   : > { %p3029_p2 = pnand %p3028_p1, %p3022_p10 }
  0x33   : > { %3032 = shalt.err (!%p3029_p2)
}
  0x34   : > { %s3033_s20 = scalar_lea.vmem %s3679_s16, 16  ;;  %s3512_s22 = smov [#allocation6]  }
  0x35   : > { %p3034_p3 = scmp.ne.s32.totalorder %s3679_s16, %s3033_s20  ;;  %s3038_s24 = sshll.u32 %s3512_s22, 4  ;;  %s3039_s24 = int_to_ptr.vmem [resolvable:$false] %s3038_s24 }
  0x36   : > { %s3040_s12 = scalar_lea.vmem %s3039_s24, 32  ;;  %p3041_p7 = scmp.lt.s32.totalorder %s3679_s16, %s3039_s24 }
  0x37   : > { %p3036_p4 = pnand %p3034_p3, %p3689_p8  ;;  %p3042_p9 = scmp.lt.s32.totalorder %s3040_s12, %s3033_s20 }
  0x39   : > { %p3037_p5 = pneg %p3036_p4  ;;  %p3043_p11 = por %p3042_p9, %p3041_p7 }
  0x3b   : > { %p3044_p12 = pnand %p3043_p11, %p3037_p5 }
  0x3d   : > { %3047 = shalt.err (!%p3044_p12)
}
  0x3e   : > { %s4479_s13 = scalar_lea.sflag [#allocation7], %s3657_s17  ;;  %s3715_s27 = sshll.u32 %s3506_s29, 8 }
  0x3f   : > { %2836 = dma.hbm_to_vmem [thread:$0]  (!%p3675_p6), %s3672_s23, 16, %s3679_s16, %s4479_s13  }
  0x40   : > { %s4480_s3 = sld [smem:[#allocation39_spill]]  ;;  %s491_s24 = scalar_lea.vmem [#allocation9], %s3682_s15 }
  0x41   : > { %s498_s12 = sshll.u32 %s491_s24, 4  ;;  %s4448_s1 = scalar_lea.sflag [#allocation10], %s3657_s17  ;;  %s3724_s12 = int_to_ptr.vmem [resolvable:$true] %s498_s12 }
  0x46   : > { %s3721_s20 = scalar_lea.hbm %s4480_s3, %s3715_s27  ;;  %s3053_s13 = scalar_lea.hbm %s4480_s3, 512 }
  0x47   : > { %s3048_s10 = scalar_lea.hbm %s3721_s20, 256  ;;  %p3054_p1 = scmp.lt.u32.totalorder %s3721_s20, %s4480_s3 }
  0x48   : > { %p3049_p10 = scmp.ne.s32.totalorder %s3721_s20, %s3048_s10  ;;  %p3055_p2 = scmp.lt.u32.totalorder %s3053_s13, %s3048_s10 }
  0x49   : > { %p3057_p4 = scmp.lt.u32.totalorder %s3048_s10, %s3721_s20 }
  0x4a   : > { %p3051_p13 = pnand %p3049_p10, %p3689_p8  ;;  %p3056_p3 = por %p3055_p2, %p3054_p1 }
  0x4c   : > { %p3052_p0 = pneg %p3051_p13  ;;  %p3058_p5 = por %p3057_p4, %p3056_p3 }
  0x4e   : > { %p3059_p7 = pnand %p3058_p5, %p3052_p0 }
  0x50   : > { %3062 = shalt.err (!%p3059_p7)
}
  0x51   : > { %s3063_s24 = scalar_lea.vmem %s3724_s12, 256  ;;  %s3513_s23 = smov [#allocation9]  }
  0x52   : > { %p3064_p9 = scmp.ne.s32.totalorder %s3724_s12, %s3063_s24  ;;  %s3068_s16 = sshll.u32 %s3513_s23, 4  ;;  %s3069_s16 = int_to_ptr.vmem [resolvable:$false] %s3068_s16 }
  0x53   : > { %s3070_s28 = scalar_lea.vmem %s3069_s16, 512  ;;  %p3071_p10 = scmp.lt.s32.totalorder %s3724_s12, %s3069_s16 }
  0x54   : > { %p3066_p11 = pnand %p3064_p9, %p3689_p8  ;;  %p3072_p13 = scmp.lt.s32.totalorder %s3070_s28, %s3063_s24 }
  0x56   : > { %p3067_p12 = pneg %p3066_p11  ;;  %p3073_p1 = por %p3072_p13, %p3071_p10 }
  0x58   : > { %p3074_p2 = pnand %p3073_p1, %p3067_p12 }
  0x5a   : > { %3077 = shalt.err (!%p3074_p2)
}
  0x5b   : > { %s4450_s10 = smov 64   ;;  %s3515_s13 = smov 4  }
  0x5c   : > { %2842 = dma.hbm_to_vmem [thread:$0]  (!%p3675_p6), %s3721_s20, 256, %s3724_s12, %s4448_s1, %s4450_s10, %s4450_s10, %s3515_s13  }
  0x5d   : > { %s4481_s5 = sld [smem:[#allocation40_spill]]  ;;  %s529_s16 = scalar_lea.vmem [#allocation12], %s3682_s15 }
  0x5e   : > { %s536_s28 = sshll.u32 %s529_s16, 4  ;;  %s4449_s3 = scalar_lea.sflag [#allocation13], %s3657_s17  ;;  %s3760_s28 = int_to_ptr.vmem [resolvable:$true] %s536_s28 }
  0x63   : > { %s3757_s23 = scalar_lea.hbm %s4481_s5, %s3715_s27  ;;  %s3083_s22 = scalar_lea.hbm %s4481_s5, 512 }
  0x64   : > { %s3078_s8 = scalar_lea.hbm %s3757_s23, 256  ;;  %p3084_p5 = scmp.lt.u32.totalorder %s3757_s23, %s4481_s5 }
  0x65   : > { %p3079_p0 = scmp.ne.s32.totalorder %s3757_s23, %s3078_s8  ;;  %p3085_p7 = scmp.lt.u32.totalorder %s3083_s22, %s3078_s8 }
  0x66   : > { %p3087_p11 = scmp.lt.u32.totalorder %s3078_s8, %s3757_s23 }
  0x67   : > { %p3081_p3 = pnand %p3079_p0, %p3689_p8  ;;  %p3086_p9 = por %p3085_p7, %p3084_p5 }
  0x69   : > { %p3082_p4 = pneg %p3081_p3  ;;  %p3088_p12 = por %p3087_p11, %p3086_p9 }
  0x6b   : > { %p3089_p10 = pnand %p3088_p12, %p3082_p4 }
  0x6d   : > { %3092 = shalt.err (!%p3089_p10)
}
  0x6e   : > { %s3093_s16 = scalar_lea.vmem %s3760_s28, 256  ;;  %s3516_s20 = smov [#allocation12]  }
  0x6f   : > { %p3094_p13 = scmp.ne.s32.totalorder %s3760_s28, %s3093_s16  ;;  %s3098_s12 = sshll.u32 %s3516_s20, 4  ;;  %s3099_s12 = int_to_ptr.vmem [resolvable:$false] %s3098_s12 }
  0x70   : > { %s3100_s1 = scalar_lea.vmem %s3099_s12, 512  ;;  %p3101_p0 = scmp.lt.s32.totalorder %s3760_s28, %s3099_s12 }
  0x71   : > { %p3096_p1 = pnand %p3094_p13, %p3689_p8  ;;  %p3102_p3 = scmp.lt.s32.totalorder %s3100_s1, %s3093_s16 }
  0x73   : > { %p3097_p2 = pneg %p3096_p1  ;;  %p3103_p5 = por %p3102_p3, %p3101_p0 }
  0x75   : > { %p3104_p7 = pnand %p3103_p5, %p3097_p2 }
  0x77   : > { %3107 = shalt.err (!%p3104_p7)
}
  0x78   : > { %2848 = dma.hbm_to_vmem [thread:$0]  (!%p3675_p6), %s3757_s23, 256, %s3760_s28, %s4449_s3, %s4450_s10, %s4450_s10, %s3515_s13  }
  0x79   : > { %s4482_s7 = sld [smem:[#allocation41_spill]]  ;;  %s566_s16 = scalar_lea.vmem [#allocation15], %s3660_s18 }
  0x7a   : > { %s573_s20 = sshll.u32 %s566_s16, 4  ;;  %s4462_s12 = scalar_lea.sflag [#allocation16], %s3657_s17  ;;  %s574_s20 = int_to_ptr.vmem [resolvable:$true] %s573_s20 }
  0x7f   : > { %s3793_s24 = scalar_lea.hbm %s4482_s7, %s3663_s19  ;;  %s3113_s28 = scalar_lea.hbm %s4482_s7, 32 }
  0x80   : > { %s3108_s1 = scalar_lea.hbm %s3793_s24, 16  ;;  %p3114_p12 = scmp.lt.u32.totalorder %s3793_s24, %s4482_s7 }
  0x81   : > { %p3109_p4 = scmp.ne.s32.totalorder %s3793_s24, %s3108_s1  ;;  %p3115_p10 = scmp.lt.u32.totalorder %s3113_s28, %s3108_s1 }
  0x82   : > { %p3117_p1 = scmp.lt.u32.totalorder %s3108_s1, %s3793_s24 }
  0x83   : > { %p3111_p9 = pnand %p3109_p4, %p3689_p8  ;;  %p3116_p13 = por %p3115_p10, %p3114_p12 }
  0x85   : > { %p3112_p11 = pneg %p3111_p9  ;;  %p3118_p2 = por %p3117_p1, %p3116_p13 }
  0x87   : > { %p3119_p0 = pnand %p3118_p2, %p3112_p11 }
  0x89   : > { %3122 = shalt.err (!%p3119_p0)
}
  0x8a   : > { %s3123_s16 = scalar_lea.vmem %s574_s20, 16  ;;  %s3517_s3 = smov [#allocation15]  }
  0x8b   : > { %p3124_p3 = scmp.ne.s32.totalorder %s574_s20, %s3123_s16  ;;  %s3128_s10 = sshll.u32 %s3517_s3, 4  ;;  %s3129_s10 = int_to_ptr.vmem [resolvable:$false] %s3128_s10 }
  0x8c   : > { %s3130_s5 = scalar_lea.vmem %s3129_s10, 32  ;;  %p3131_p4 = scmp.lt.s32.totalorder %s574_s20, %s3129_s10 }
  0x8d   : > { %p3126_p5 = pnand %p3124_p3, %p3689_p8  ;;  %p3132_p9 = scmp.lt.s32.totalorder %s3130_s5, %s3123_s16 }
  0x8f   : > { %p3127_p7 = pneg %p3126_p5  ;;  %p3133_p6 = por %p3132_p9, %p3131_p4 }
  0x91   : > { %p3134_p10 = pnand %p3133_p6, %p3127_p7 }
  0x93   : > { %3137 = shalt.err (!%p3134_p10)
}
  0x94   : > { %p4483_p12 = scmp.ne.s32.totalorder %s4477_s14, 0  ;;  %s3820_s23 = scalar_lea.hbm %s4437_s9, %s3715_s27 }
  0x95   : > { %s601_s10 = scalar_lea.vmem [#allocation18], %s3682_s15  ;;  %s2546_s8 = sshll.u32 %s3660_s18, 6 }
  0x96   : > { %2854 = dma.hbm_to_vmem [thread:$0]  (!%p4483_p12), %s3793_s24, 16, %s574_s20, %s4462_s12  }
  0x97   : > { %s608_s28 = sshll.u32 %s601_s10, 4  ;;  %s4455_s22 = scalar_lea.sflag [#allocation19], %s3657_s17  ;;  %s3823_s28 = int_to_ptr.vmem [resolvable:$true] %s608_s28 }
  0x98   : > { %s3138_s16 = scalar_lea.hbm %s3820_s23, 256  ;;  %s3143_s27 = scalar_lea.hbm %s4437_s9, 512 }
  0x99   : > { %p3139_p6 = scmp.ne.s32.totalorder %s3820_s23, %s3138_s16  ;;  %p3144_p1 = scmp.lt.u32.totalorder %s3820_s23, %s4437_s9 }
  0x9a   : > { %p3145_p2 = scmp.lt.u32.totalorder %s3143_s27, %s3138_s16  ;;  %p3147_p3 = scmp.lt.u32.totalorder %s3138_s16, %s3820_s23 }
  0x9b   : > { %p3141_p11 = pnand %p3139_p6, %p3689_p8 }
  0x9c   : > { %p3146_p0 = por %p3145_p2, %p3144_p1 }
  0x9d   : > { %p3142_p13 = pneg %p3141_p11 }
  0x9e   : > { %p3148_p5 = por %p3147_p3, %p3146_p0 }
  0xa0   : > { %p3149_p7 = pnand %p3148_p5, %p3142_p13 }
  0xa2   : > { %3152 = shalt.err (!%p3149_p7)
}
  0xa3   : > { %s3153_s15 = scalar_lea.vmem %s3823_s28, 256  ;;  %s3518_s3 = smov [#allocation18]  }
  0xa4   : > { %p3154_p4 = scmp.ne.s32.totalorder %s3823_s28, %s3153_s15  ;;  %s3158_s10 = sshll.u32 %s3518_s3, 4  ;;  %s3159_s10 = int_to_ptr.vmem [resolvable:$false] %s3158_s10 }
  0xa5   : > { %s3160_s24 = scalar_lea.vmem %s3159_s10, 512  ;;  %p3161_p6 = scmp.lt.s32.totalorder %s3823_s28, %s3159_s10 }
  0xa6   : > { %p3156_p9 = pnand %p3154_p4, %p3689_p8  ;;  %p3162_p11 = scmp.lt.s32.totalorder %s3160_s24, %s3153_s15 }
  0xa8   : > { %p3157_p10 = pneg %p3156_p9  ;;  %p3163_p1 = por %p3162_p11, %p3161_p6 }
  0xaa   : > { %p3164_p2 = pnand %p3163_p1, %p3157_p10 }
  0xac   : > { %3167 = shalt.err (!%p3164_p2)
}
  0xad   : > { %s4484_s16 = smov 64   ;;  %s2606_s20 = sshll.u32 %s3506_s29, 10 }
  0xae   : > { %2860 = dma.hbm_to_vmem [thread:$0]  (!%p4483_p12), %s3820_s23, 256, %s3823_s28, %s4455_s22, %s4484_s16, %s4484_s16, %s3515_s13  }
  0xaf   : > { %s3857_s1 = scalar_lea.hbm %s4439_s11, %s2606_s20  ;;  %s639_s15 = scalar_lea.vmem [#allocation21], %s2546_s8 }
  0xb0   : > { %s646_s3 = sshll.u32 %s639_s15, 4  ;;  %s4454_s10 = scalar_lea.sflag [#allocation22], %s3657_s17  ;;  %s3861_s3 = int_to_ptr.vmem [resolvable:$true] %s646_s3 }
  0xb1   : > { %s3168_s24 = scalar_lea.hbm %s3857_s1, 1024  ;;  %s3173_s20 = scalar_lea.hbm %s4439_s11, 2048 }
  0xb2   : > { %p3169_p13 = scmp.ne.s32.totalorder %s3857_s1, %s3168_s24  ;;  %p3174_p5 = scmp.lt.u32.totalorder %s3857_s1, %s4439_s11 }
  0xb3   : > { %p3175_p7 = scmp.lt.u32.totalorder %s3173_s20, %s3168_s24  ;;  %p3177_p9 = scmp.lt.u32.totalorder %s3168_s24, %s3857_s1 }
  0xb4   : > { %p3171_p0 = pnand %p3169_p13, %p3689_p8 }
  0xb5   : > { %p3176_p4 = por %p3175_p7, %p3174_p5 }
  0xb6   : > { %p3172_p3 = pneg %p3171_p0 }
  0xb7   : > { %p3178_p10 = por %p3177_p9, %p3176_p4 }
  0xb9   : > { %p3179_p6 = pnand %p3178_p10, %p3172_p3 }
  0xbb   : > { %3182 = shalt.err (!%p3179_p6)
}
  0xbc   : > { %s3183_s8 = scalar_lea.vmem %s3861_s3, 1024  ;;  %s3519_s15 = smov [#allocation21]  }
  0xbd   : > { %p3184_p11 = scmp.ne.s32.totalorder %s3861_s3, %s3183_s8  ;;  %s3188_s23 = sshll.u32 %s3519_s15, 4  ;;  %s3189_s23 = int_to_ptr.vmem [resolvable:$false] %s3188_s23 }
  0xbe   : > { %s3190_s28 = scalar_lea.vmem %s3189_s23, 2048  ;;  %p3191_p13 = scmp.lt.s32.totalorder %s3861_s3, %s3189_s23 }
  0xbf   : > { %p3186_p1 = pnand %p3184_p11, %p3689_p8  ;;  %p3192_p0 = scmp.lt.s32.totalorder %s3190_s28, %s3183_s8 }
  0xc1   : > { %p3187_p2 = pneg %p3186_p1  ;;  %p3193_p5 = por %p3192_p0, %p3191_p13 }
  0xc3   : > { %p3194_p7 = pnand %p3193_p5, %p3187_p2 }
  0xc5   : > { %3197 = shalt.err (!%p3194_p7)
}
  0xc6   : > { %2866 = dma.hbm_to_vmem [thread:$0]  (!%p4483_p12), %s3857_s1, 1024, %s3861_s3, %s4454_s10, %s4484_s16, %s4484_s16, %s3515_s13  }
  0xc7   : > { %s3891_s24 = sadd.s32 4294967295, %s3510_s30   ;;  %p101_p3 = scmp.ne.s32.totalorder %s3494_s26, %s3490_s25 }
  0xc8   : > { %p4456_p4 = scmp.eq.s32.totalorder %s3891_s24, 0  ;;  %p2527_p9 = scmp.ge.s32.totalorder %s3510_s30, 1 }
  0xc9   : > { %p424_p10 = scmp.lt.s32.totalorder %s3510_s30, 3  ;;  %s3520_s13 = smov [#allocation3]  }
  0xca   : > { %p3900_p6 = por %p4456_p4, %p101_p3  ;;  %s439_s16 = sshll.u32 %s3520_s13, 4  ;;  %s440_s16 = int_to_ptr.vmem [resolvable:$true] %s439_s16 }
  0xcb   : > { %p3904_p11 = pnand %p2527_p9, %p424_p10  ;;  %s3920_s5 = scalar_lea.hbm %s4430_s2, %s3663_s19 }
  0xcc   : > { %s4485_s20 = scalar_select %p3900_p6, 1, 0 }
  0xcd   : > { %s4486_s27 = scalar_select %p3904_p11, 1, 0 }
  0xce   : > { %p2829_p1 = pneg %p3904_p11  ;;  %s473_s8 = scalar_lea.vmem [#allocation8], %s3660_s18 }
  0xcf   : > { %s480_s15 = sshll.u32 %s473_s8, 4  ;;  %s4488_s0 = sld [smem:[#allocation37_spill]]  ;;  %s3923_s15 = int_to_ptr.vmem [resolvable:$true] %s480_s15 }
  0xd0   : > { %p3912_p2 = pnand %p2829_p1, %p4456_p4 }
  0xd2   : > { %p3200_p0 = pneg %p3912_p2 }
  0xd5   : > { %s3198_s13 = scalar_lea.hbm %s4488_s0, 256 }
  0xd6   : > { %p3199_p13 = scmp.ne.s32.totalorder %s4488_s0, %s3198_s13  ;;  %p3205_p3 = scmp.lt.u32.totalorder %s3198_s13, %s4488_s0 }
  0xd8   : > { %p3201_p5 = pnand %p3200_p0, %p3199_p13 }
  0xda   : > { %p3202_p7 = pneg %p3201_p5 }
  0xdc   : > { %p3207_p9 = pnand %p3205_p3, %p3202_p7 }
  0xde   : > { %3210 = shalt.err (!%p3207_p9)
}
  0xdf   : > { %s3211_s8 = scalar_lea.vmem %s440_s16, 256  ;;  %p3219_p6 = scmp.lt.s32.totalorder %s440_s16, %s440_s16 }
  0xe0   : > { %p3212_p10 = scmp.ne.s32.totalorder %s440_s16, %s3211_s8  ;;  %p3220_p11 = scmp.lt.s32.totalorder %s3211_s8, %s3211_s8 }
  0xe2   : > { %p3214_p1 = pnand %p3212_p10, %p3200_p0  ;;  %p3221_p12 = por %p3220_p11, %p3219_p6 }
  0xe4   : > { %p3215_p4 = pneg %p3214_p1 }
  0xe6   : > { %p3222_p8 = pnand %p3221_p12, %p3215_p4 }
  0xe8   : > { %3225 = shalt.err (!%p3222_p8)
}
  0xe9   : > { %s3521_s22 = smov 128   ;;  %s3522_s10 = smov 8  }
  0xea   : > { %2832 = dma.hbm_to_vmem [thread:$0]  (!%p3912_p2), %s4488_s0, 256, %s440_s16, [#allocation4], %s3521_s22, %s3521_s22, %s3522_s10  }
  0xeb   : > { %s3226_s13 = scalar_lea.hbm %s3920_s5, 16  ;;  %p4489_p0 = scmp.ne.s32.totalorder %s4478_s21, 0 }
  0xec   : > { %p3227_p13 = scmp.ne.s32.totalorder %s3920_s5, %s3226_s13  ;;  %s3231_s8 = scalar_lea.hbm %s4430_s2, 32 }
  0xed   : > { %p3232_p8 = scmp.lt.u32.totalorder %s3920_s5, %s4430_s2  ;;  %p3233_p12 = scmp.lt.u32.totalorder %s3231_s8, %s3226_s13 }
  0xee   : > { %p3229_p5 = pnand %p3227_p13, %p4489_p0  ;;  %p3235_p11 = scmp.lt.u32.totalorder %s3226_s13, %s3920_s5 }
  0xef   : > { %p3234_p4 = por %p3233_p12, %p3232_p8 }
  0xf0   : > { %p3230_p6 = pneg %p3229_p5 }
  0xf1   : > { %p3236_p7 = por %p3235_p11, %p3234_p4 }
  0xf3   : > { %p3237_p3 = pnand %p3236_p7, %p3230_p6 }
  0xf5   : > { %3240 = shalt.err (!%p3237_p3)
}
  0xf6   : > { %s3241_s16 = scalar_lea.vmem %s3923_s15, 16  ;;  %s3523_s25 = smov [#allocation8]  }
  0xf7   : > { %p3242_p2 = scmp.ne.s32.totalorder %s3923_s15, %s3241_s16  ;;  %s3246_s22 = sshll.u32 %s3523_s25, 4  ;;  %s3247_s22 = int_to_ptr.vmem [resolvable:$false] %s3246_s22 }
  0xf8   : > { %s3248_s7 = scalar_lea.vmem %s3247_s22, 32  ;;  %p3249_p1 = scmp.lt.s32.totalorder %s3923_s15, %s3247_s22 }
  0xf9   : > { %p3244_p9 = pnand %p3242_p2, %p4489_p0  ;;  %p3250_p13 = scmp.lt.s32.totalorder %s3248_s7, %s3241_s16 }
  0xfb   : > { %p3245_p10 = pneg %p3244_p9  ;;  %p3251_p5 = por %p3250_p13, %p3249_p1 }
  0xfd   : > { %p3252_p8 = pnand %p3251_p5, %p3245_p10 }
  0xff   : > { %3255 = shalt.err (!%p3252_p8)
}
 0x100   : > { %p4490_p6 = scmp.ne.s32.totalorder %s4477_s14, 0  ;;  %s4491_s12 = scalar_lea.sflag [#allocation7], %s3657_s17 }
 0x101   : > { %s3968_s28 = scalar_lea.hbm %s4432_s4, %s3663_s19  ;;  %s511_s13 = scalar_lea.vmem [#allocation11], %s3660_s18 }
 0x102   : > { %2839 = dma.hbm_to_vmem [thread:$0]  (!%p4490_p6), %s3920_s5, 16, %s3923_s15, %s4491_s12  }
 0x103   : > { %s518_s1 = sshll.u32 %s511_s13, 4  ;;  %s3256_s3 = scalar_lea.hbm %s3968_s28, 16  ;;  %s519_s1 = int_to_ptr.vmem [resolvable:$true] %s518_s1 }
 0x104   : > { %p3257_p12 = scmp.ne.s32.totalorder %s3968_s28, %s3256_s3  ;;  %s3261_s5 = scalar_lea.hbm %s4432_s4, 32 }
 0x105   : > { %p3262_p7 = scmp.lt.u32.totalorder %s3968_s28, %s4432_s4  ;;  %p3263_p3 = scmp.lt.u32.totalorder %s3261_s5, %s3256_s3 }
 0x106   : > { %p3259_p4 = pnand %p3257_p12, %p4489_p0  ;;  %p3265_p9 = scmp.lt.u32.totalorder %s3256_s3, %s3968_s28 }
 0x107   : > { %p3264_p2 = por %p3263_p3, %p3262_p7 }
 0x108   : > { %p3260_p11 = pneg %p3259_p4 }
 0x109   : > { %p3266_p10 = por %p3265_p9, %p3264_p2 }
 0x10b   : > { %p3267_p1 = pnand %p3266_p10, %p3260_p11 }
 0x10d   : > { %3270 = shalt.err (!%p3267_p1)
}
 0x10e   : > { %s3271_s22 = scalar_lea.vmem %s519_s1, 16  ;;  %s3524_s7 = smov [#allocation11]  }
 0x10f   : > { %p3272_p13 = scmp.ne.s32.totalorder %s519_s1, %s3271_s22  ;;  %s3276_s12 = sshll.u32 %s3524_s7, 4  ;;  %s3277_s12 = int_to_ptr.vmem [resolvable:$false] %s3276_s12 }
 0x110   : > { %s3278_s10 = scalar_lea.vmem %s3277_s12, 32  ;;  %p3279_p12 = scmp.lt.s32.totalorder %s519_s1, %s3277_s12 }
 0x111   : > { %p3274_p5 = pnand %p3272_p13, %p4489_p0  ;;  %p3280_p4 = scmp.lt.s32.totalorder %s3278_s10, %s3271_s22 }
 0x113   : > { %p3275_p8 = pneg %p3274_p5  ;;  %p3281_p6 = por %p3280_p4, %p3279_p12 }
 0x115   : > { %p3282_p3 = pnand %p3281_p6, %p3275_p8 }
 0x117   : > { %3285 = shalt.err (!%p3282_p3)
}
 0x118   : > { %p4492_p7 = scmp.ne.s32.totalorder %s4477_s14, 0  ;;  %s4493_s23 = scalar_lea.sflag [#allocation10], %s3657_s17 }
 0x119   : > { %s3994_s8 = scalar_lea.hbm %s4434_s6, %s3663_s19  ;;  %s549_s16 = scalar_lea.vmem [#allocation14], %s3660_s18 }
 0x11a   : > { %2845 = dma.hbm_to_vmem [thread:$0]  (!%p4492_p7), %s3968_s28, 16, %s519_s1, %s4493_s23  }
 0x11b   : > { %s556_s5 = sshll.u32 %s549_s16, 4  ;;  %s3286_s15 = scalar_lea.hbm %s3994_s8, 16  ;;  %s557_s5 = int_to_ptr.vmem [resolvable:$true] %s556_s5 }
 0x11c   : > { %p3287_p6 = scmp.ne.s32.totalorder %s3994_s8, %s3286_s15  ;;  %s3291_s28 = scalar_lea.hbm %s4434_s6, 32 }
 0x11d   : > { %p3292_p9 = scmp.lt.u32.totalorder %s3994_s8, %s4434_s6  ;;  %p3293_p10 = scmp.lt.u32.totalorder %s3291_s28, %s3286_s15 }
 0x11e   : > { %p3289_p11 = pnand %p3287_p6, %p4489_p0  ;;  %p3295_p13 = scmp.lt.u32.totalorder %s3286_s15, %s3994_s8 }
 0x11f   : > { %p3294_p1 = por %p3293_p10, %p3292_p9 }
 0x120   : > { %p3290_p2 = pneg %p3289_p11 }
 0x121   : > { %p3296_p5 = por %p3295_p13, %p3294_p1 }
 0x123   : > { %p3297_p8 = pnand %p3296_p5, %p3290_p2 }
 0x125   : > { %3300 = shalt.err (!%p3297_p8)
}
 0x126   : > { %s3301_s12 = scalar_lea.vmem %s557_s5, 16  ;;  %s3525_s10 = smov [#allocation14]  }
 0x127   : > { %p3302_p12 = scmp.ne.s32.totalorder %s557_s5, %s3301_s12  ;;  %s3306_s23 = sshll.u32 %s3525_s10, 4  ;;  %s3307_s23 = int_to_ptr.vmem [resolvable:$false] %s3306_s23 }
 0x128   : > { %s3308_s13 = scalar_lea.vmem %s3307_s23, 32  ;;  %p3309_p6 = scmp.lt.s32.totalorder %s557_s5, %s3307_s23 }
 0x129   : > { %p3304_p4 = pnand %p3302_p12, %p4489_p0  ;;  %p3310_p11 = scmp.lt.s32.totalorder %s3308_s13, %s3301_s12 }
 0x12b   : > { %p3305_p3 = pneg %p3304_p4  ;;  %p3311_p7 = por %p3310_p11, %p3309_p6 }
 0x12d   : > { %p3312_p9 = pnand %p3311_p7, %p3305_p3 }
 0x12f   : > { %3315 = shalt.err (!%p3312_p9)
}
 0x130   : > { %p4494_p10 = scmp.ne.s32.totalorder %s4477_s14, 0  ;;  %s4495_s3 = scalar_lea.sflag [#allocation13], %s3657_s17 }
 0x131   : > { %s4496_s25 = sld [smem:[#allocation42_spill]]  ;;  %s583_s1 = scalar_lea.vmem [#allocation17], %s3660_s18 }
 0x132   : > { %2851 = dma.hbm_to_vmem [thread:$0]  (!%p4494_p10), %s3994_s8, 16, %s557_s5, %s4495_s3  }
 0x133   : > { %s590_s7 = sshll.u32 %s583_s1, 4  ;;  %s591_s7 = int_to_ptr.vmem [resolvable:$true] %s590_s7 }
 0x137   : > { %s4497_s22 = smov %s4496_s25  ;;  %s4020_s28 = scalar_lea.hbm %s4496_s25, %s3663_s19 }
 0x138   : > { %s3316_s12 = scalar_lea.hbm %s4020_s28, 16  ;;  %s3321_s8 = scalar_lea.hbm %s4497_s22, 32 }
 0x139   : > { %p3317_p7 = scmp.ne.s32.totalorder %s4020_s28, %s3316_s12  ;;  %p3322_p13 = scmp.lt.u32.totalorder %s4020_s28, %s4497_s22 }
 0x13a   : > { %p3323_p5 = scmp.lt.u32.totalorder %s3321_s8, %s3316_s12  ;;  %p3325_p12 = scmp.lt.u32.totalorder %s3316_s12, %s4020_s28 }
 0x13b   : > { %p3319_p2 = pnand %p3317_p7, %p4489_p0 }
 0x13c   : > { %p3324_p8 = por %p3323_p5, %p3322_p13 }
 0x13d   : > { %p3320_p1 = pneg %p3319_p2 }
 0x13e   : > { %p3326_p4 = por %p3325_p12, %p3324_p8 }
 0x140   : > { %p3327_p3 = pnand %p3326_p4, %p3320_p1 }
 0x142   : > { %3330 = shalt.err (!%p3327_p3)
}
 0x143   : > { %s3331_s3 = scalar_lea.vmem %s591_s7, 16  ;;  %s3526_s16 = smov [#allocation17]  }
 0x144   : > { %p3332_p6 = scmp.ne.s32.totalorder %s591_s7, %s3331_s3  ;;  %s3336_s15 = sshll.u32 %s3526_s16, 4  ;;  %s3337_s15 = int_to_ptr.vmem [resolvable:$false] %s3336_s15 }
 0x145   : > { %s3338_s25 = scalar_lea.vmem %s3337_s15, 32  ;;  %p3339_p7 = scmp.lt.s32.totalorder %s591_s7, %s3337_s15 }
 0x146   : > { %p3334_p11 = pnand %p3332_p6, %p4489_p0  ;;  %p3340_p2 = scmp.lt.s32.totalorder %s3338_s25, %s3331_s3 }
 0x148   : > { %p3335_p9 = pneg %p3334_p11  ;;  %p3341_p10 = por %p3340_p2, %p3339_p7 }
 0x14a   : > { %p3342_p5 = pnand %p3341_p10, %p3335_p9 }
 0x14c   : > { %3345 = shalt.err (!%p3342_p5)
}
 0x14d   : > { %p4498_p13 = scmp.ne.s32.totalorder %s4477_s14, 0  ;;  %s4499_s1 = scalar_lea.sflag [#allocation16], %s3657_s17 }
 0x14e   : > { %s4500_s23 = sld [smem:[#allocation43_spill]]  ;;  %s621_s5 = scalar_lea.vmem [#allocation20], %s3660_s18 }
 0x14f   : > { %2857 = dma.hbm_to_vmem [thread:$0]  (!%p4498_p13), %s4020_s28, 16, %s591_s7, %s4499_s1  }
 0x150   : > { %s628_s13 = sshll.u32 %s621_s5, 4  ;;  %s629_s13 = int_to_ptr.vmem [resolvable:$true] %s628_s13 }
 0x154   : > { %s4046_s8 = scalar_lea.hbm %s4500_s23, %s3663_s19  ;;  %s3351_s28 = scalar_lea.hbm %s4500_s23, 32 }
 0x155   : > { %s3346_s3 = scalar_lea.hbm %s4046_s8, 16  ;;  %p3352_p12 = scmp.lt.u32.totalorder %s4046_s8, %s4500_s23 }
 0x156   : > { %p3347_p10 = scmp.ne.s32.totalorder %s4046_s8, %s3346_s3  ;;  %p3353_p4 = scmp.lt.u32.totalorder %s3351_s28, %s3346_s3 }
 0x157   : > { %p3355_p6 = scmp.lt.u32.totalorder %s3346_s3, %s4046_s8 }
 0x158   : > { %p3349_p1 = pnand %p3347_p10, %p4489_p0  ;;  %p3354_p3 = por %p3353_p4, %p3352_p12 }
 0x15a   : > { %p3350_p8 = pneg %p3349_p1  ;;  %p3356_p11 = por %p3355_p6, %p3354_p3 }
 0x15c   : > { %p3357_p9 = pnand %p3356_p11, %p3350_p8 }
 0x15e   : > { %3360 = shalt.err (!%p3357_p9)
}
 0x15f   : > { %s3361_s1 = scalar_lea.vmem %s629_s13, 16  ;;  %s3527_s12 = smov [#allocation20]  }
 0x160   : > { %p3362_p7 = scmp.ne.s32.totalorder %s629_s13, %s3361_s1  ;;  %s3366_s10 = sshll.u32 %s3527_s12, 4  ;;  %s3367_s10 = int_to_ptr.vmem [resolvable:$false] %s3366_s10 }
 0x161   : > { %s3368_s5 = scalar_lea.vmem %s3367_s10, 32  ;;  %p3369_p10 = scmp.lt.s32.totalorder %s629_s13, %s3367_s10 }
 0x162   : > { %p3364_p2 = pnand %p3362_p7, %p4489_p0  ;;  %p3370_p1 = scmp.lt.s32.totalorder %s3368_s5, %s3361_s1 }
 0x164   : > { %p3365_p5 = pneg %p3364_p2  ;;  %p3371_p13 = por %p3370_p1, %p3369_p10 }
 0x166   : > { %p3372_p4 = pnand %p3371_p13, %p3365_p5 }
 0x168   : > { %3375 = shalt.err (!%p3372_p4)
}
 0x169   : > { %p4501_p12 = scmp.ne.s32.totalorder %s4477_s14, 0  ;;  %s4502_s3 = scalar_lea.sflag [#allocation19], %s3657_s17 }
 0x16a   : > { %s4503_s28 = sld [smem:[#allocation44_spill]]  ;;  %s659_s1 = scalar_lea.vmem [#allocation23], %s3660_s18 }
 0x16b   : > { %2863 = dma.hbm_to_vmem [thread:$0]  (!%p4501_p12), %s4046_s8, 16, %s629_s13, %s4502_s3  }
 0x16c   : > { %s666_s12 = sshll.u32 %s659_s1, 4  ;;  %s667_s12 = int_to_ptr.vmem [resolvable:$true] %s666_s12 }
 0x170   : > { %s4504_s7 = smov %s4503_s28  ;;  %s4072_s25 = scalar_lea.hbm %s4503_s28, %s3663_s19 }
 0x171   : > { %s3376_s10 = scalar_lea.hbm %s4072_s25, 16  ;;  %s3381_s8 = scalar_lea.hbm %s4504_s7, 32 }
 0x172   : > { %p3377_p13 = scmp.ne.s32.totalorder %s4072_s25, %s3376_s10  ;;  %p3382_p6 = scmp.lt.u32.totalorder %s4072_s25, %s4504_s7 }
 0x173   : > { %p3383_p11 = scmp.lt.u32.totalorder %s3381_s8, %s3376_s10  ;;  %p3385_p7 = scmp.lt.u32.totalorder %s3376_s10, %s4072_s25 }
 0x174   : > { %p3379_p8 = pnand %p3377_p13, %p4489_p0 }
 0x175   : > { %p3384_p9 = por %p3383_p11, %p3382_p6 }
 0x176   : > { %p3380_p3 = pneg %p3379_p8 }
 0x177   : > { %p3386_p2 = por %p3385_p7, %p3384_p9 }
 0x179   : > { %p3387_p5 = pnand %p3386_p2, %p3380_p3 }
 0x17b   : > { %3390 = shalt.err (!%p3387_p5)
}
 0x17c   : > { %s3391_s18 = scalar_lea.vmem %s667_s12, 16  ;;  %s3528_s19 = smov [#allocation23]  }
 0x17d   : > { %p3392_p10 = scmp.ne.s32.totalorder %s667_s12, %s3391_s18  ;;  %s3396_s16 = sshll.u32 %s3528_s19, 4  ;;  %s3397_s16 = int_to_ptr.vmem [resolvable:$false] %s3396_s16 }
 0x17e   : > { %s3398_s0 = scalar_lea.vmem %s3397_s16, 32  ;;  %p3399_p13 = scmp.lt.s32.totalorder %s667_s12, %s3397_s16 }
 0x17f   : > { %p3394_p1 = pnand %p3392_p10, %p4489_p0  ;;  %p3400_p8 = scmp.lt.s32.totalorder %s3398_s0, %s3391_s18 }
 0x181   : > { %p3395_p4 = pneg %p3394_p1  ;;  %p3401_p12 = por %p3400_p8, %p3399_p13 }
 0x183   : > { %p3402_p6 = pnand %p3401_p12, %p3395_p4 }
 0x185   : > { %3405 = shalt.err (!%p3402_p6)
}
 0x186   : > { %p4505_p11 = scmp.ne.s32.totalorder %s4477_s14, 0  ;;  %s4506_s15 = scalar_lea.sflag [#allocation22], %s3657_s17 }
 0x187   : > { %p4507_p3 = scmp.ne.s32.totalorder %s4486_s27, 0 }
 0x188   : > { %2869 = dma.hbm_to_vmem [thread:$0]  (!%p4505_p11), %s4072_s25, 16, %s667_s12, %s4506_s15  }
 0x189   : > { %675 = sbr.rel (%p4507_p3) target bundleno = 4607 (0x11ff), region = 72  ;;  %p4508_p0 = scmp.eq.s32.totalorder (!%p4507_p3), %s3891_s24, 0 }
 0x190   : > { %3457 = dma.done.wait (%p4508_p0), [#allocation4], 256   ;;  %p4509_p9 = pmov %p4508_p0 }
 0x191   : > { %s4101_s21 = sand.u32 1, %s3891_s24   ;;  %s4104_s14 = sand.u32 1, %s3494_s26  }
 0x192   : > { %3459 = vsyncadd (%p4509_p9), [#allocation4], 4294967040  ;;  %s682_s17 = scalar_lea.sflag [#allocation7], %s4101_s21  ;;  %s684_s28 = scalar_lea.vmem [#allocation6], %s4104_s14 }
 0x193   : > { %p4510_p12 = scmp.ne.s32.totalorder %s4485_s20, 0 }
 0x195   : > { %3461 = dma.done.wait (%p4510_p12), %s682_s17, 32  }
 0x196   : > { %3463 = vsyncadd (%p4510_p12), %s682_s17, 4294967264  ;;  %s4113_s27 = sshll.u32 %s4104_s14, 4  ;;  %s692_s25 = scalar_lea.vmem [#allocation8], %s4104_s14 }
 0x197   : > { %s698_s1 = scalar_lea.sflag [#allocation10], %s4101_s21  ;;  %s701_s12 = scalar_lea.vmem [#allocation9], %s4113_s27 }
 0x198   : > { %3465 = dma.done.wait (%p4510_p12), %s698_s1, 272  }
 0x199   : > { %3467 = vsyncadd (%p4510_p12), %s698_s1, 4294967024  ;;  %s709_s10 = scalar_lea.vmem [#allocation11], %s4104_s14  ;;  %s715_s5 = scalar_lea.sflag [#allocation13], %s4101_s21 }
 0x19a   : > { %s718_s8 = scalar_lea.vmem [#allocation12], %s4113_s27 }
 0x19b   : > { %3469 = dma.done.wait (%p4510_p12), %s715_s5, 272  }
 0x19c   : > { %3471 = vsyncadd (%p4510_p12), %s715_s5, 4294967024  ;;  %s726_s13 = scalar_lea.vmem [#allocation14], %s4104_s14  ;;  %s732_s3 = scalar_lea.sflag [#allocation16], %s4101_s21 }
 0x19d   : > { %s734_s18 = scalar_lea.vmem [#allocation15], %s4104_s14 }
 0x19e   : > { %3473 = dma.done.wait (%p4510_p12), %s732_s3, 32  }
 0x19f   : > { %3475 = vsyncadd (%p4510_p12), %s732_s3, 4294967264  ;;  %s748_s16 = scalar_lea.sflag [#allocation19], %s4101_s21  ;;  %s751_s0 = scalar_lea.vmem [#allocation18], %s4113_s27 }
 0x1a0   : > { %3477 = dma.done.wait (%p4510_p12), %s748_s16, 272  }
 0x1a1   : > { %3479 = vsyncadd (%p4510_p12), %s748_s16, 4294967024  ;;  %s2555_s15 = sshll.u32 %s4104_s14, 6  ;;  %s759_s17 = scalar_lea.vmem [#allocation20], %s4104_s14 }
 0x1a2   : > { %s765_s1 = scalar_lea.sflag [#allocation22], %s4101_s21  ;;  %s4146_s5 = scalar_lea.vmem [#allocation21], %s2555_s15 }
 0x1a3   : > { %3481 = dma.done.wait (%p4510_p12), %s765_s1, 1040  }
 0x1a4   : > { %3483 = vsyncadd (%p4510_p12), %s765_s1, 4294966256  ;;  %s776_s3 = scalar_lea.vmem [#allocation23], %s4104_s14  ;;  %s4511_s19 = sld [smem:[#allocation34_spill]] }
 0x1aa   : > { %p2556_p7 = scmp.ne.s32.totalorder %s4511_s19, 0 }
 0x1ab   : > { %v867_v0 = vld [vmem:[#allocation3] sm:$0xff] (!%p2556_p7)  ;;  %vm869_vm0 = vcmask (!%p2556_p7), 261120   ;;  %v868_v1 = vld [vmem:[#allocation3 + $0x8] sm:$0xff] (!%p2556_p7) }
 0x1ac   : > { %866 = sbr.rel (%p2556_p7) target bundleno = 435 (0x1b3), region = 128  ;;  %870 = vst.msk [vmem:[#allocation2] sm:$0xff] (!%p2556_p7), %vm869_vm0, %v867_v0  ;;  %871 = vst.msk [vmem:[#allocation2 + $0x8] sm:$0xff] (!%p2556_p7), %vm869_vm0, %v868_v1 }
 0x1b3 PF: > { %v4154_v2 = vld [vmem:[#allocation2] sm:$0xff]  ;;  %vm876_vm1 = vcmask 261120   ;;  %v4156_v3 = vld [vmem:[#allocation2 + $0x8] sm:$0xff]  ;;  %v3529_v17 = vmov 0.0   ;;  %vm3530_vm2 = vmmov 0   ;;  %s3531_s20 = smov 96  }
 0x1b4   : > { %v877_v4 = vsel %vm876_vm1, %v4154_v2, 0.0  ;;  %v880_v5 = vsel %vm876_vm1, %v4156_v3, 0.0  ;;  %v2960_v16 = vld [vmem:[%s701_s12] sm:$0xff]   ;;  %2657 = vmatprep.subr.bf16.mxu0 %v3529_v17  ;;  %2677 = vmatprep.subr.bf16.mxu1 %v3529_v17  ;;  %v2961_v18 = vld [vmem:[%s701_s12 + $0x8] sm:$0xff]   ;;  %vm993_vm3 = vcmask 64512   ;;  %s3532_s21 = smov 64  }
 0x1b5   : > { %878 = vadd.xlane.f32.xlu0 %v877_v4  ;;  %2658 = vmatpush3.bf16.msra.mxu0 %v2960_v16  ;;  %v2557_v27 = vld [vmem:[%s684_s28] ss:$0 sm:$0xff]  ;;  %s3533_s28 = smov 88   ;;  %vm1120_vm4 = vcmask 1043456   ;;  %s3535_s12 = smov 56   ;;  %vm1904_vm5 = vcmask 130048  }
 0x1b6   : > { %2661 = vmatprep.mubr.msk.bf16.mxu0 %vm3530_vm2, %v3529_v17  ;;  %2659 = vmatprep.subr.bf16.mxu0 %v3529_v17  ;;  %v2558_v31 = vld [vmem:[%s692_s25] ss:$0 sm:$0xff]  ;;  %s3534_s25 = smov 120   ;;  %s3537_s19 = smov 112   ;;  %vm1907_vm6 = vcmask 195584  }
 0x1b7   : > { %2679 = vmatprep.mubr.msk.bf16.mxu1 %vm3530_vm2, %v3529_v17  ;;  %v2559_v36 = vld [vmem:[%s709_s10] ss:$0 sm:$0xff]  ;;  %s3536_s10 = smov 80   ;;  %s3538_s16 = smov 48  }
 0x1b8   : > { %s3539_s15 = smov 72   ;;  %s3540_s1 = smov 104  }
 0x1b9   : > { %881 = vadd.xlane.f32.xlu0 %v880_v5  ;;  %2660 = vmatpush3.bf16.msra.mxu0 %v2961_v18  ;;  %s4512_s27 = scalar_lea.vmem [#allocation17], %s4104_s14 }
 0x1ba   : > { %2665 = vmatprep.subr.bf16.mxu0 %v3529_v17 }
 0x242   : > { %v879_v6 = vpop.xlane.xlu0 %878 }
 0x243   : > { %v884_v7 = vmul.f32 0.03125, %v879_v6 }
 0x245   : > { %v886_v8 = vsub.f32 %v4154_v2, %v884_v7 }
 0x246   : > { %v882_v9 = vpop.xlane.xlu0 %881 }
 0x247   : > { %v885_v10 = vmul.f32 0.03125, %v882_v9  ;;  %v888_v11 = vmul.f32 %v886_v8, %v886_v8 }
 0x249   : > { %v887_v12 = vsub.f32 %v4156_v3, %v885_v10  ;;  %v890_v13 = vsel %vm876_vm1, %v888_v11, 0.0 }
 0x24a   : > { %891 = vadd.xlane.f32.xlu1 %v890_v13 }
 0x24b   : > { %v889_v14 = vmul.f32 %v887_v12, %v887_v12 }
 0x24d   : > { %v893_v15 = vsel %vm876_vm1, %v889_v14, 0.0 }
 0x24e   : > { %894 = vadd.xlane.f32.xlu1 %v893_v15 }
 0x2d7   : > { %v892_v19 = vpop.xlane.xlu1 %891 }
 0x2d8   : > { %v896_v20 = vmul.f32 0.03125, %v892_v19 }
 0x2da   : > { %v898_v21 = vadd.f32 1e-05, %v896_v20 }
 0x2db   : > { %v895_v22 = vpop.xlane.xlu1 %894 }
 0x2dc   : > { %2974 = vrsqrt.f32 %v898_v21  ;;  %v897_v23 = vmul.f32 0.03125, %v895_v22 }
 0x2de   : > { %v899_v24 = vadd.f32 1e-05, %v897_v23 }
 0x2e0   : > { %2976 = vrsqrt.f32 %v899_v24 }
 0x2e6   : > { %v2975_v25 = vpop.eup %2974 }
 0x2e7   : > { %v902_v26 = vmul.f32 %v2975_v25, %v886_v8 }
 0x2e9   : > { %v910_v30 = vmul.f32 %v2557_v27, %v902_v26 }
 0x2ea   : > { %v2977_v28 = vpop.eup %2976 }
 0x2eb   : > { %v903_v29 = vmul.f32 %v2977_v28, %v887_v12  ;;  %v918_v33 = vadd.f32 %v2558_v31, %v910_v30 }
 0x2ed   : > { %v911_v32 = vmul.f32 %v2557_v27, %v903_v29 }
 0x2ef   : > { %v919_v34 = vadd.f32 %v2558_v31, %v911_v32 }
 0x2f1   : > { %v920_v35 = vpack.c.bf16 %v919_v34, %v918_v33 }
 0x2f3   : > { %2662 = vmatmul.mubr.msk.bf16.vlgmr.msra.gmra.mrb[0].mxu0 %vm876_vm1, %v920_v35 }
 0x2f4   : > { %2667 = vmatprep.mubr.msk.bf16.mxu0 %vm3530_vm2, %v3529_v17 }
 0x3c6   : > { %v981_v37 = vpop.f32.mrb[0].mxu0 }
 0x3c7   : > { %v982_v38 = vadd.f32 %v2559_v36, %v981_v37  ;;  %v2663_v39 = vpop.f32.mrb[1].mxu0 }
 0x3c8   : > { %v984_v40 = vpop.f32.mrb[2].mxu0 }
 0x3c9   : > { %v4187_v41 = vpack.c.bf16 %v982_v38, %v982_v38  ;;  %v985_v42 = vadd.f32 %v2559_v36, %v984_v40  ;;  %v2664_v43 = vpop.f32.mrb[3].mxu0 }
 0x3cb   : > { %v4189_v44 = vpack.c.bf16 %v985_v42, %v985_v42  ;;  %991 = vrot.lane.b32.xlu0 %v4187_v41, %s3531_s20 }
 0x3cd   : > { %1041 = vrot.lane.b32.xlu1 %v4189_v44, %s3531_s20  ;;  %s3541_s20 = smov 40  }
 0x43d   : > { %v992_v45 = vpop.permute.xlu0 %991 }
 0x43e   : > { %v998_v46 = vsel %vm993_vm3, %v992_v45, 0 }
 0x43f   : > { %2666 = vmatpush3.bf16.xpose.msra.mxu0 %v998_v46  ;;  %v1042_v47 = vpop.permute.xlu1 %1041 }
 0x440   : > { %2671 = vmatprep.subr.bf16.mxu0 %v3529_v17  ;;  %v1047_v48 = vsel %vm993_vm3, %v1042_v47, 0 }
 0x446   : > { %2668 = vmatmul.mubr.msk.bf16.vlgmr.msra.gmra.mrb[4].mxu0 %vm993_vm3, %v4187_v41 }
 0x447   : > { %2672 = vmatpush3.bf16.xpose.msra.mxu0 %v1047_v48  ;;  %2673 = vmatprep.mubr.msk.bf16.mxu0 %vm3530_vm2, %v3529_v17 }
 0x448   : > { %2683 = vmatprep.subr.bf16.mxu0 %v3529_v17 }
 0x44e   : > { %2674 = vmatmul.mubr.msk.bf16.vlgmr.msra.gmra.mrb[8].mxu0 %vm993_vm3, %v4189_v44 }
 0x44f   : > { %2685 = vmatprep.mubr.msk.bf16.mxu0 %vm3530_vm2, %v3529_v17 }
 0x519   : > { %v1034_v49 = vpop.f32.mrb[4].mxu0 }
 0x51a   : > { %v1089_v50 = vmul.f32 0.35355338, %v1034_v49  ;;  %v2669_v51 = vpop.f32.mrb[5].mxu0 }
 0x51b   : > { %v1037_v52 = vpop.f32.mrb[6].mxu0 }
 0x51c   : > { %v2670_v53 = vpop.f32.mrb[7].mxu0  ;;  %v1091_v54 = vsel %vm993_vm3, %v1089_v50, -inf }
 0x51d   : > { %1092 = vmax.xlane.f32.xlu1 %v1091_v54 }
 0x521   : > { %v1083_v55 = vpop.f32.mrb[8].mxu0 }
 0x522   : > { %v1090_v56 = vmul.f32 0.35355338, %v1083_v55  ;;  %v2675_v57 = vpop.f32.mrb[9].mxu0 }
 0x523   : > { %v1086_v58 = vpop.f32.mrb[10].mxu0 }
 0x524   : > { %v2676_v59 = vpop.f32.mrb[11].mxu0  ;;  %v1094_v60 = vsel %vm993_vm3, %v1090_v56, -inf }
 0x525   : > { %1095 = vmax.xlane.f32.xlu0 %v1094_v60 }
 0x52e   : > { %1164 = vrot.lane.b32.xlu1 %v4189_v44, %s3532_s21 }
 0x532   : > { %1214 = vrot.lane.b32.xlu1 %v4187_v41, %s3533_s28 }
 0x5aa   : > { %v1093_v61 = vpop.xlane.xlu1 %1092 }
 0x5ab   : > { %v1097_v62 = vsub.f32 %v1089_v50, %v1093_v61 }
 0x5ad   : > { %v1099_v63 = vmul.f32 1.442695, %v1097_v62 }
 0x5ae   : > { %v1165_v0 = vpop.permute.xlu1 %1164 }
 0x5af   : > { %2978 = vpow2.f32 %v1099_v63  ;;  %v1170_v1 = vsel %vm1120_vm4, %v1165_v0, 0 }
 0x5b0   : > { %2684 = vmatpush3.bf16.msra.mxu0 %v1170_v1 }
 0x5b1   : > { %2695 = vmatprep.subr.bf16.mxu0 %v3529_v17 }
 0x5b2   : > { %v1096_v4 = vpop.xlane.xlu0 %1095  ;;  %v1215_v12 = vpop.permute.xlu1 %1214 }
 0x5b3   : > { %v1098_v5 = vsub.f32 %v1090_v56, %v1096_v4  ;;  %v1220_v20 = vsel %vm993_vm3, %v1215_v12, 0 }
 0x5b5   : > { %v1101_v6 = vmul.f32 1.442695, %v1098_v5 }
 0x5b7   : > { %2980 = vpow2.f32 %v1101_v6 }
 0x5b9   : > { %v2979_v7 = vpop.eup %2978 }
 0x5ba   : > { %v1103_v8 = vsel %vm993_vm3, %v2979_v7, 0.0 }
 0x5bb   : > { %1104 = vadd.xlane.f32.xlu0 %v1103_v8 }
 0x5c1   : > { %v2981_v9 = vpop.eup %2980 }
 0x5c2   : > { %v1106_v10 = vsel %vm993_vm3, %v2981_v9, 0.0 }
 0x5c3   : > { %1107 = vadd.xlane.f32.xlu1 %v1106_v10 }
 0x5d1   : > { %1115 = vrot.lane.b32.xlu0 %v4187_v41, %s3532_s21  ;;  %s3542_s21 = smov 8  }
 0x5d4   : > { %1264 = vrot.lane.b32.xlu1 %v4189_v44, %s3533_s28  ;;  %s3543_s28 = smov 16  }
 0x5d5   : > { %1212 = vrot.lane.b32.xlu0 %v4187_v41, %s3534_s25 }
 0x5d8   : > { %1262 = vrot.lane.b32.xlu1 %v4189_v44, %s3534_s25  ;;  %s3544_s25 = smov 24  }
 0x648   : > { %v1105_v11 = vpop.xlane.xlu0 %1104 }
 0x649   : > { %2982 = vrcp.f32 %v1105_v11 }
 0x64c   : > { %v1116_v13 = vpop.permute.xlu0 %1115 }
 0x64d   : > { %v1122_v14 = vsel %vm1120_vm4, %v1116_v13, 0 }
 0x64e   : > { %2678 = vmatpush3.bf16.msra.mxu1 %v1122_v14 }
 0x64f   : > { %2689 = vmatprep.subr.bf16.mxu1 %v3529_v17 }
 0x650   : > { %v1108_v15 = vpop.xlane.xlu1 %1107  ;;  %v1213_v25 = vpop.permute.xlu0 %1212 }
 0x651   : > { %2984 = vrcp.f32 %v1108_v15 }
 0x653   : > { %v2983_v16 = vpop.eup %2982 }
 0x654   : > { %v1111_v18 = vmul.f32 %v2983_v16, %v2979_v7  ;;  %v1265_v23 = vpop.permute.xlu1 %1264 }
 0x655   : > { %v1270_v26 = vsel %vm993_vm3, %v1265_v23, 0 }
 0x656   : > { %v1113_v19 = vpack.c.bf16 %v1111_v18, %v1111_v18 }
 0x658   : > { %2680 = vmatmul.mubr.msk.bf16.vlgmr.msra.gmra.mrb[0].mxu1 %vm993_vm3, %v1113_v19  ;;  %v1263_v27 = vpop.permute.xlu1 %1262 }
 0x659   : > { %2690 = vmatpush3.bf16.xpose.msra.mxu1 %v1220_v20  ;;  %2691 = vmatprep.mubr.msk.bf16.mxu1 %vm3530_vm2, %v3529_v17 }
 0x65a   : > { %2701 = vmatprep.subr.bf16.mxu1 %v3529_v17 }
 0x65b   : > { %v2985_v21 = vpop.eup %2984 }
 0x65c   : > { %v1112_v22 = vmul.f32 %v2985_v21, %v2981_v9 }
 0x65e   : > { %v1114_v24 = vpack.c.bf16 %v1112_v22, %v1112_v22 }
 0x660   : > { %2686 = vmatmul.mubr.msk.bf16.vlgmr.msra.gmra.mrb[12].mxu0 %vm993_vm3, %v1114_v24  ;;  %2692 = vmatmul.mubr.msk.bf16.vlgmr.msra.gmra.mrb[4].mxu1 %vm993_vm3, %v1213_v25 }
 0x661   : > { %2696 = vmatpush3.bf16.xpose.msra.mxu0 %v1270_v26  ;;  %2697 = vmatprep.mubr.msk.bf16.mxu0 %vm3530_vm2, %v3529_v17 }
 0x662   : > { %2707 = vmatprep.subr.bf16.mxu0 %v3529_v17  ;;  %2703 = vmatprep.mubr.msk.bf16.mxu1 %vm3530_vm2, %v3529_v17 }
 0x668   : > { %2698 = vmatmul.mubr.msk.bf16.vlgmr.msra.gmra.mrb[16].mxu0 %vm993_vm3, %v1263_v27 }
 0x669   : > { %2709 = vmatprep.mubr.msk.bf16.mxu0 %vm3530_vm2, %v3529_v17 }
 0x72b   : > { %v4235_v28 = vpop.f32.mrb[0].mxu1 }
 0x72c   : > { %v2681_v29 = vpop.f32.mrb[1].mxu1 }
 0x72d   : > { %v1161_v30 = vpop.f32.mrb[2].mxu1 }
 0x72e   : > { %v2682_v31 = vpop.f32.mrb[3].mxu1 }
 0x733   : > { %v4237_v32 = vpop.f32.mrb[12].mxu0  ;;  %v1256_v33 = vpop.f32.mrb[4].mxu1 }
 0x734   : > { %v1312_v34 = vmul.f32 0.35355338, %v1256_v33  ;;  %v2687_v35 = vpop.f32.mrb[13].mxu0  ;;  %v2693_v36 = vpop.f32.mrb[5].mxu1 }
 0x735   : > { %v1209_v37 = vpop.f32.mrb[14].mxu0  ;;  %v1259_v38 = vpop.f32.mrb[6].mxu1 }
 0x736   : > { %v2688_v39 = vpop.f32.mrb[15].mxu0  ;;  %v2694_v40 = vpop.f32.mrb[7].mxu1  ;;  %v1314_v42 = vsel %vm993_vm3, %v1312_v34, -inf }
 0x737   : > { %1315 = vmax.xlane.f32.xlu0 %v1314_v42 }
 0x73b   : > { %v1306_v43 = vpop.f32.mrb[16].mxu0 }
 0x73c   : > { %v1313_v45 = vmul.f32 0.35355338, %v1306_v43  ;;  %v2699_v46 = vpop.f32.mrb[17].mxu0 }
 0x73d   : > { %v1309_v47 = vpop.f32.mrb[18].mxu0 }
 0x73e   : > { %v2700_v48 = vpop.f32.mrb[19].mxu0  ;;  %v1317_v49 = vsel %vm993_vm3, %v1313_v45, -inf }
 0x73f   : > { %1318 = vmax.xlane.f32.xlu1 %v1317_v49 }
 0x750   : > { %1386 = vrot.lane.b32.xlu1 %v4189_v44, %s3535_s12 }
 0x754   : > { %1436 = vrot.lane.b32.xlu1 %v4187_v41, %s3536_s10 }
 0x758   : > { %1486 = vrot.lane.b32.xlu1 %v4189_v44, %s3536_s10 }
 0x75c   : > { %1484 = vrot.lane.b32.xlu1 %v4189_v44, %s3537_s19 }
 0x7c4   : > { %v1316_v50 = vpop.xlane.xlu0 %1315 }
 0x7c5   : > { %v1320_v51 = vsub.f32 %v1312_v34, %v1316_v50 }
 0x7c7   : > { %v1322_v52 = vmul.f32 1.442695, %v1320_v51 }
 0x7c9   : > { %2986 = vpow2.f32 %v1322_v52 }
 0x7cc   : > { %v1319_v53 = vpop.xlane.xlu1 %1318 }
 0x7cd   : > { %v1321_v54 = vsub.f32 %v1313_v45, %v1319_v53 }
 0x7cf   : > { %v1324_v55 = vmul.f32 1.442695, %v1321_v54 }
 0x7d0   : > { %v1387_v56 = vpop.permute.xlu1 %1386 }
 0x7d1   : > { %2988 = vpow2.f32 %v1324_v55  ;;  %v1392_v57 = vsel %vm1120_vm4, %v1387_v56, 0 }
 0x7d2   : > { %2708 = vmatpush3.bf16.msra.mxu0 %v1392_v57 }
 0x7d3   : > { %v2987_v58 = vpop.eup %2986  ;;  %2719 = vmatprep.subr.bf16.mxu0 %v3529_v17 }
 0x7d4   : > { %v1326_v59 = vsel %vm993_vm3, %v2987_v58, 0.0  ;;  %v1437_v7 = vpop.permute.xlu1 %1436 }
 0x7d5   : > { %1327 = vadd.xlane.f32.xlu0 %v1326_v59  ;;  %v1442_v11 = vsel %vm993_vm3, %v1437_v7, 0 }
 0x7d8   : > { %v1487_v10 = vpop.permute.xlu1 %1486 }
 0x7d9   : > { %v1492_v13 = vsel %vm993_vm3, %v1487_v10, 0 }
 0x7db   : > { %v2989_v60 = vpop.eup %2988 }
 0x7dc   : > { %v1329_v61 = vsel %vm993_vm3, %v2989_v60, 0.0  ;;  %v1485_v15 = vpop.permute.xlu1 %1484 }
 0x7dd   : > { %1330 = vadd.xlane.f32.xlu0 %v1329_v61 }
 0x7f3   : > { %1338 = vrot.lane.b32.xlu0 %v4187_v41, %s3535_s12 }
 0x7f7   : > { %1434 = vrot.lane.b32.xlu0 %v4187_v41, %s3537_s19 }
 0x862   : > { %v1328_v62 = vpop.xlane.xlu0 %1327 }
 0x863   : > { %2990 = vrcp.f32 %v1328_v62 }
 0x86a   : > { %v1331_v63 = vpop.xlane.xlu0 %1330 }
 0x86b   : > { %2992 = vrcp.f32 %v1331_v63 }
 0x86d   : > { %v2991_v0 = vpop.eup %2990 }
 0x86e   : > { %v1334_v1 = vmul.f32 %v2991_v0, %v2987_v58  ;;  %v1339_v4 = vpop.permute.xlu0 %1338 }
 0x86f   : > { %v1344_v5 = vsel %vm1120_vm4, %v1339_v4, 0 }
 0x870   : > { %2702 = vmatpush3.bf16.msra.mxu1 %v1344_v5  ;;  %v1336_v6 = vpack.c.bf16 %v1334_v1, %v1334_v1 }
 0x871   : > { %2713 = vmatprep.subr.bf16.mxu1 %v3529_v17 }
 0x872   : > { %v1435_v14 = vpop.permute.xlu0 %1434 }
 0x873   : > { %2704 = vmatmul.mubr.msk.bf16.vlgmr.msra.gmra.mrb[8].mxu1 %vm993_vm3, %v1336_v6 }
 0x874   : > { %2715 = vmatprep.mubr.msk.bf16.mxu1 %vm3530_vm2, %v3529_v17 }
 0x875   : > { %v2993_v8 = vpop.eup %2992 }
 0x876   : > { %v1335_v9 = vmul.f32 %v2993_v8, %v2989_v60 }
 0x878   : > { %v1337_v12 = vpack.c.bf16 %v1335_v9, %v1335_v9 }
 0x879   : > { %2714 = vmatpush3.bf16.xpose.msra.mxu1 %v1442_v11 }
 0x87a   : > { %2710 = vmatmul.mubr.msk.bf16.vlgmr.msra.gmra.mrb[20].mxu0 %vm993_vm3, %v1337_v12  ;;  %2725 = vmatprep.subr.bf16.mxu1 %v3529_v17 }
 0x87b   : > { %2720 = vmatpush3.bf16.xpose.msra.mxu0 %v1492_v13  ;;  %2721 = vmatprep.mubr.msk.bf16.mxu0 %vm3530_vm2, %v3529_v17 }
 0x87c   : > { %2731 = vmatprep.subr.bf16.mxu0 %v3529_v17 }
 0x880   : > { %2716 = vmatmul.mubr.msk.bf16.vlgmr.msra.gmra.mrb[12].mxu1 %vm993_vm3, %v1435_v14 }
 0x881   : > { %2727 = vmatprep.mubr.msk.bf16.mxu1 %vm3530_vm2, %v3529_v17 }
 0x882   : > { %2722 = vmatmul.mubr.msk.bf16.vlgmr.msra.gmra.mrb[24].mxu0 %vm993_vm3, %v1485_v15 }
 0x883   : > { %2733 = vmatprep.mubr.msk.bf16.mxu0 %vm3530_vm2, %v3529_v17 }
 0x946   : > { %v4269_v16 = vpop.f32.mrb[8].mxu1 }
 0x947   : > { %v2705_v18 = vpop.f32.mrb[9].mxu1 }
 0x948   : > { %v1383_v19 = vpop.f32.mrb[10].mxu1 }
 0x949   : > { %v2706_v20 = vpop.f32.mrb[11].mxu1 }
 0x94d   : > { %v4271_v21 = vpop.f32.mrb[20].mxu0 }
 0x94e   : > { %v2945_v22 = vpack.i.bf16 %v4271_v21, %v4269_v16  ;;  %v2711_v23 = vpop.f32.mrb[21].mxu0 }
 0x94f   : > { %v1431_v24 = vpop.f32.mrb[22].mxu0 }
 0x950   : > { %v2712_v25 = vpop.f32.mrb[23].mxu0 }
 0x953   : > { %v1478_v26 = vpop.f32.mrb[12].mxu1 }
 0x954   : > { %v1534_v27 = vmul.f32 0.35355338, %v1478_v26  ;;  %v2717_v29 = vpop.f32.mrb[13].mxu1 }
 0x955   : > { %v1481_v30 = vpop.f32.mrb[14].mxu1  ;;  %v1528_v31 = vpop.f32.mrb[24].mxu0 }
 0x956   : > { %v1535_v33 = vmul.f32 0.35355338, %v1528_v31  ;;  %v2718_v34 = vpop.f32.mrb[15].mxu1  ;;  %v2723_v35 = vpop.f32.mrb[25].mxu0  ;;  %v1536_v36 = vsel %vm993_vm3, %v1534_v27, -inf }
 0x957   : > { %1537 = vmax.xlane.f32.xlu0 %v1536_v36  ;;  %v1531_v37 = vpop.f32.mrb[26].mxu0 }
 0x958   : > { %v2724_v38 = vpop.f32.mrb[27].mxu0  ;;  %v1539_v39 = vsel %vm993_vm3, %v1535_v33, -inf }
 0x959   : > { %1540 = vmax.xlane.f32.xlu1 %v1539_v39 }
 0x96a   : > { %1608 = vrot.lane.b32.xlu1 %v4189_v44, %s3538_s16 }
 0x96e   : > { %1658 = vrot.lane.b32.xlu1 %v4187_v41, %s3539_s15 }
 0x972   : > { %1708 = vrot.lane.b32.xlu1 %v4189_v44, %s3539_s15 }
 0x976   : > { %1706 = vrot.lane.b32.xlu1 %v4189_v44, %s3540_s1 }
 0x9e4   : > { %v1538_v40 = vpop.xlane.xlu0 %1537 }
 0x9e5   : > { %v1542_v42 = vsub.f32 %v1534_v27, %v1538_v40 }
 0x9e6   : > { %v1541_v43 = vpop.xlane.xlu1 %1540 }
 0x9e7   : > { %v1544_v45 = vmul.f32 1.442695, %v1542_v42  ;;  %v1543_v46 = vsub.f32 %v1535_v33, %v1541_v43 }
 0x9e9   : > { %2994 = vpow2.f32 %v1544_v45  ;;  %v1546_v47 = vmul.f32 1.442695, %v1543_v46 }
 0x9ea   : > { %v1609_v48 = vpop.permute.xlu1 %1608 }
 0x9eb   : > { %2996 = vpow2.f32 %v1546_v47  ;;  %v1614_v49 = vsel %vm1120_vm4, %v1609_v48, 0 }
 0x9ec   : > { %2732 = vmatpush3.bf16.msra.mxu0 %v1614_v49 }
 0x9ed   : > { %2743 = vmatprep.subr.bf16.mxu0 %v3529_v17 }
 0x9ee   : > { %v1659_v59 = vpop.permute.xlu1 %1658 }
 0x9ef   : > { %v1664_v1 = vsel %vm993_vm3, %v1659_v59, 0 }
 0x9f2   : > { %v1709_v0 = vpop.permute.xlu1 %1708 }
 0x9f3   : > { %v2995_v50 = vpop.eup %2994  ;;  %v1714_v5 = vsel %vm993_vm3, %v1709_v0, 0 }
 0x9f4   : > { %v1548_v51 = vsel %vm993_vm3, %v2995_v50, 0.0 }
 0x9f5   : > { %v2997_v52 = vpop.eup %2996  ;;  %1549 = vadd.xlane.f32.xlu0 %v1548_v51 }
 0x9f6   : > { %v1551_v53 = vsel %vm993_vm3, %v2997_v52, 0.0  ;;  %v1707_v7 = vpop.permute.xlu1 %1706 }
 0x9f9   : > { %1552 = vadd.xlane.f32.xlu0 %v1551_v53 }
 0xa0f   : > { %1560 = vrot.lane.b32.xlu0 %v4187_v41, %s3538_s16 }
 0xa13   : > { %1656 = vrot.lane.b32.xlu0 %v4187_v41, %s3540_s1 }
 0xa82   : > { %v1550_v54 = vpop.xlane.xlu0 %1549 }
 0xa83   : > { %2998 = vrcp.f32 %v1550_v54  ;;  %v2962_v54 = vld [vmem:[%s718_s8] sm:$0xff]  }
 0xa86   : > { %v1553_v55 = vpop.xlane.xlu0 %1552 }
 0xa87   : > { %3000 = vrcp.f32 %v1553_v55  ;;  %v2963_v55 = vld [vmem:[%s718_s8 + $0x8] sm:$0xff]   ;;  %s4513_s8 = sld [smem:[#allocation34_spill]] }
 0xa8a   : > { %v1561_v56 = vpop.permute.xlu0 %1560 }
 0xa8b   : > { %v1566_v57 = vsel %vm1120_vm4, %v1561_v56, 0 }
 0xa8c   : > { %2726 = vmatpush3.bf16.msra.mxu1 %v1566_v57 }
 0xa8d   : > { %v2999_v58 = vpop.eup %2998  ;;  %2737 = vmatprep.subr.bf16.mxu1 %v3529_v17  ;;  %p2598_p2 = scmp.ne.s32.totalorder %s4513_s8, 1 }
 0xa8e   : > { %v1556_v60 = vmul.f32 %v2999_v58, %v2995_v50  ;;  %v1657_v6 = vpop.permute.xlu0 %1656  ;;  %vm2226_vm7 = vcmask (!%p2598_p2), 1041409   ;;  %vm2229_vm8 = vcmask (!%p2598_p2), 254976  }
 0xa90   : > { %v1558_v61 = vpack.c.bf16 %v1556_v60, %v1556_v60 }
 0xa91   : > { %v3001_v62 = vpop.eup %3000 }
 0xa92   : > { %v1557_v63 = vmul.f32 %v3001_v62, %v2997_v52  ;;  %2728 = vmatmul.mubr.msk.bf16.vlgmr.msra.gmra.mrb[16].mxu1 %vm993_vm3, %v1558_v61 }
 0xa93   : > { %2739 = vmatprep.mubr.msk.bf16.mxu1 %vm3530_vm2, %v3529_v17 }
 0xa94   : > { %v1559_v4 = vpack.c.bf16 %v1557_v63, %v1557_v63 }
 0xa95   : > { %2738 = vmatpush3.bf16.xpose.msra.mxu1 %v1664_v1 }
 0xa96   : > { %2734 = vmatmul.mubr.msk.bf16.vlgmr.msra.gmra.mrb[28].mxu0 %vm993_vm3, %v1559_v4  ;;  %2749 = vmatprep.subr.bf16.mxu1 %v3529_v17 }
 0xa97   : > { %2744 = vmatpush3.bf16.xpose.msra.mxu0 %v1714_v5  ;;  %2745 = vmatprep.mubr.msk.bf16.mxu0 %vm3530_vm2, %v3529_v17 }
 0xa98   : > { %2755 = vmatprep.subr.bf16.mxu0 %v3529_v17 }
 0xa9c   : > { %2740 = vmatmul.mubr.msk.bf16.vlgmr.msra.gmra.mrb[20].mxu1 %vm993_vm3, %v1657_v6 }
 0xa9d   : > { %2751 = vmatprep.mubr.msk.bf16.mxu1 %vm3530_vm2, %v3529_v17 }
 0xa9e   : > { %2746 = vmatmul.mubr.msk.bf16.vlgmr.msra.gmra.mrb[32].mxu0 %vm993_vm3, %v1707_v7 }
 0xa9f   : > { %2757 = vmatprep.mubr.msk.bf16.mxu0 %vm3530_vm2, %v3529_v17 }
 0xb65   : > { %v1602_v8 = vpop.f32.mrb[16].mxu1 }
 0xb66   : > { %v2729_v9 = vpop.f32.mrb[17].mxu1 }
 0xb67   : > { %v1605_v10 = vpop.f32.mrb[18].mxu1 }
 0xb68   : > { %v2730_v11 = vpop.f32.mrb[19].mxu1 }
 0xb69   : > { %v1650_v12 = vpop.f32.mrb[28].mxu0 }
 0xb6a   : > { %v2950_v13 = vpack.i.bf16 %v1650_v12, %v1602_v8  ;;  %v2735_v14 = vpop.f32.mrb[29].mxu0 }
 0xb6b   : > { %v1653_v15 = vpop.f32.mrb[30].mxu0 }
 0xb6c   : > { %v2736_v18 = vpop.f32.mrb[31].mxu0 }
 0xb6f   : > { %v1700_v19 = vpop.f32.mrb[20].mxu1 }
 0xb70   : > { %v1756_v20 = vmul.f32 0.35355338, %v1700_v19  ;;  %v2741_v23 = vpop.f32.mrb[21].mxu1 }
 0xb71   : > { %v1703_v24 = vpop.f32.mrb[22].mxu1  ;;  %v1750_v25 = vpop.f32.mrb[32].mxu0  ;;  %v2579_v23 = vld [vmem:[%s726_s13] ss:$0 sm:$0xff] }
 0xb72   : > { %v1757_v26 = vmul.f32 0.35355338, %v1750_v25  ;;  %v2742_v27 = vpop.f32.mrb[23].mxu1  ;;  %v2747_v29 = vpop.f32.mrb[33].mxu0  ;;  %v1758_v30 = vsel %vm993_vm3, %v1756_v20, -inf }
 0xb73   : > { %1759 = vmax.xlane.f32.xlu0 %v1758_v30  ;;  %v1753_v31 = vpop.f32.mrb[34].mxu0 }
 0xb74   : > { %v2748_v33 = vpop.f32.mrb[35].mxu0  ;;  %v1761_v34 = vsel %vm993_vm3, %v1757_v26, -inf }
 0xb75   : > { %1762 = vmax.xlane.f32.xlu1 %v1761_v34 }
 0xb86   : > { %1830 = vrot.lane.b32.xlu1 %v4189_v44, %s3541_s20 }
 0xb8a   : > { %2946 = vrot.lane.b32.xlu1 %v2945_v22, %s3542_s21 }
 0xb8e   : > { %2951 = vrot.lane.b32.xlu1 %v2950_v13, %s3543_s28 }
 0xc00   : > { %v1760_v35 = vpop.xlane.xlu0 %1759 }
 0xc01   : > { %v1764_v36 = vsub.f32 %v1756_v20, %v1760_v35 }
 0xc02   : > { %v1763_v37 = vpop.xlane.xlu1 %1762 }
 0xc03   : > { %v1766_v38 = vmul.f32 1.442695, %v1764_v36  ;;  %v1765_v39 = vsub.f32 %v1757_v26, %v1763_v37 }
 0xc05   : > { %3002 = vpow2.f32 %v1766_v38  ;;  %v1768_v40 = vmul.f32 1.442695, %v1765_v39 }
 0xc06   : > { %v1831_v42 = vpop.permute.xlu1 %1830 }
 0xc07   : > { %3004 = vpow2.f32 %v1768_v40  ;;  %v1836_v43 = vsel %vm1120_vm4, %v1831_v42, 0 }
 0xc08   : > { %2756 = vmatpush3.bf16.msra.mxu0 %v1836_v43  ;;  %v2964_v43 = vld [vmem:[%s751_s0] sm:$0xff]  }
 0xc09   : > { %2769 = vmatprep.subr.bf16.mxu0 %v3529_v17 }
 0xc0a   : > { %v2947_v1 = vpop.permute.xlu1 %2946 }
 0xc0b   : > { %v2949_v5 = vunpack.i.h.bf16 %v2947_v1  ;;  %v2948_v6 = vunpack.i.l.bf16 %v2947_v1  ;;  %v2973_v1 = vld [vmem:[%s4146_s5 + $0x38] sm:$0xff]  }
 0xc0d   : > { %v1903_v10 = vsel %vm993_vm3, %v4237_v32, %v2949_v5  ;;  %v1902_v11 = vsel %vm993_vm3, %v4235_v28, %v2948_v6 }
 0xc0e   : > { %v2952_v4 = vpop.permute.xlu1 %2951 }
 0xc0f   : > { %v3003_v44 = vpop.eup %3002  ;;  %v2954_v7 = vunpack.i.h.bf16 %v2952_v4  ;;  %v2953_v8 = vunpack.i.l.bf16 %v2952_v4  ;;  %v2585_v4 = vld [vmem:[%s759_s17] ss:$0 sm:$0xff] }
 0xc10   : > { %v1770_v16 = vsel %vm993_vm3, %v3003_v44, 0.0 }
 0xc11   : > { %v3005_v21 = vpop.eup %3004  ;;  %1771 = vadd.xlane.f32.xlu0 %v1770_v16  ;;  %v1905_v14 = vsel %vm1904_vm5, %v1902_v11, %v2953_v8  ;;  %v1906_v15 = vsel %vm1904_vm5, %v1903_v10, %v2954_v7  ;;  %v2966_v16 = vld [vmem:[%s4146_s5] sm:$0xff]  }
 0xc12   : > { %v1773_v22 = vsel %vm993_vm3, %v3005_v21, 0.0 }
 0xc15   : > { %1774 = vadd.xlane.f32.xlu0 %v1773_v22 }
 0xc2b   : > { %1782 = vrot.lane.b32.xlu0 %v4187_v41, %s3541_s20 }
 0xc9e   : > { %v1772_v45 = vpop.xlane.xlu0 %1771 }
 0xc9f   : > { %3006 = vrcp.f32 %v1772_v45 }
 0xca2   : > { %v1775_v46 = vpop.xlane.xlu0 %1774 }
 0xca3   : > { %3008 = vrcp.f32 %v1775_v46 }
 0xca6   : > { %v1783_v47 = vpop.permute.xlu0 %1782 }
 0xca7   : > { %v1788_v48 = vsel %vm1120_vm4, %v1783_v47, 0 }
 0xca8   : > { %2750 = vmatpush3.bf16.msra.mxu1 %v1788_v48 }
 0xca9   : > { %v3007_v49 = vpop.eup %3006  ;;  %2761 = vmatprep.subr.bf16.mxu1 %v3529_v17 }
 0xcaa   : > { %v1778_v50 = vmul.f32 %v3007_v49, %v3003_v44  ;;  %v2965_v44 = vld [vmem:[%s751_s0 + $0x8] sm:$0xff]  }
 0xcac   : > { %v1780_v51 = vpack.c.bf16 %v1778_v50, %v1778_v50 }
 0xcad   : > { %v3009_v52 = vpop.eup %3008 }
 0xcae   : > { %v1779_v53 = vmul.f32 %v3009_v52, %v3005_v21  ;;  %2752 = vmatmul.mubr.msk.bf16.vlgmr.msra.gmra.mrb[24].mxu1 %vm993_vm3, %v1780_v51  ;;  %v2967_v21 = vld [vmem:[%s4146_s5 + $0x8] sm:$0xff]   ;;  %v2583_v52 = vld [vmem:[%s734_s18] ss:$0 sm:$0xff] }
 0xcaf   : > { %2765 = vmatprep.mubr.msk.bf16.mxu1 %vm3530_vm2, %v3529_v17  ;;  %2762 = vmatpush3.bf16.msra.mxu1 %v2962_v54 }
 0xcb0   : > { %v1781_v41 = vpack.c.bf16 %v1779_v53, %v1779_v53  ;;  %2763 = vmatprep.subr.bf16.mxu1 %v3529_v17 }
 0xcb2   : > { %2758 = vmatmul.mubr.msk.bf16.vlgmr.msra.gmra.mrb[36].mxu0 %vm993_vm3, %v1781_v41 }
 0xcb3   : > { %2773 = vmatprep.mubr.msk.bf16.mxu0 %vm3530_vm2, %v3529_v17  ;;  %2764 = vmatpush3.bf16.msra.mxu1 %v2963_v55  ;;  %v2584_v55 = vld [vmem:[%s4512_s27] ss:$0 sm:$0xff] }
 0xcb4   : > { %2777 = vmatprep.subr.bf16.mxu1 %v3529_v17  ;;  %2770 = vmatpush3.bf16.msra.mxu0 %v2964_v43 }
 0xcb5   : > { %2771 = vmatprep.subr.bf16.mxu0 %v3529_v17 }
 0xcb8   : > { %2772 = vmatpush3.bf16.msra.mxu0 %v2965_v44 }
 0xd81   : > { %v1824_v56 = vpop.f32.mrb[24].mxu1 }
 0xd82   : > { %v2753_v57 = vpop.f32.mrb[25].mxu1 }
 0xd83   : > { %v1827_v58 = vpop.f32.mrb[26].mxu1 }
 0xd84   : > { %v2754_v59 = vpop.f32.mrb[27].mxu1 }
 0xd85   : > { %v1872_v60 = vpop.f32.mrb[36].mxu0 }
 0xd86   : > { %v2955_v61 = vpack.i.bf16 %v1872_v60, %v1824_v56  ;;  %v2759_v62 = vpop.f32.mrb[37].mxu0  ;;  %v2968_v60 = vld [vmem:[%s4146_s5 + $0x10] sm:$0xff]  }
 0xd87   : > { %v1875_v63 = vpop.f32.mrb[38].mxu0  ;;  %v2970_v62 = vld [vmem:[%s4146_s5 + $0x20] sm:$0xff]  }
 0xd88   : > { %2956 = vrot.lane.b32.xlu0 %v2955_v61, %s3544_s25  ;;  %v2760_v0 = vpop.f32.mrb[39].mxu0  ;;  %v2969_v61 = vld [vmem:[%s4146_s5 + $0x18] sm:$0xff]   ;;  %v2971_v63 = vld [vmem:[%s4146_s5 + $0x28] sm:$0xff]  }
 0xd89   : > { %v2972_v0 = vld [vmem:[%s4146_s5 + $0x30] sm:$0xff]  }
 0xdfa   : > { %v2957_v9 = vpop.permute.xlu0 %2956 }
 0xdfb   : > { %v2959_v12 = vunpack.i.h.bf16 %v2957_v9  ;;  %v2958_v13 = vunpack.i.l.bf16 %v2957_v9 }
 0xdfd   : > { %v1909_v18 = vsel %vm1907_vm6, %v1906_v15, %v2959_v12  ;;  %v1908_v19 = vsel %vm1907_vm6, %v1905_v14, %v2958_v13 }
 0xdfe   : > { %v1910_v20 = vpack.c.bf16 %v1909_v18, %v1908_v19 }
 0xe00   : > { %2766 = vmatmul.mubr.msk.bf16.vlgmr.msra.gmra.mrb[28].mxu1 %vm876_vm1, %v1910_v20 }
 0xe01   : > { %2793 = vmatprep.mubr.msk.bf16.mxu1 %vm3530_vm2, %v3529_v17  ;;  %2778 = vmatpush3.bf16.msra.mxu1 %v2966_v16 }
 0xe02   : > { %2779 = vmatprep.subr.bf16.mxu1 %v3529_v17 }
 0xe05   : > { %2780 = vmatpush3.bf16.msra.mxu1 %v2967_v21 }
 0xe06   : > { %2781 = vmatprep.subr.bf16.mxu1 %v3529_v17 }
 0xe09   : > { %2782 = vmatpush3.bf16.msra.mxu1 %v2968_v60 }
 0xe0a   : > { %2783 = vmatprep.subr.bf16.mxu1 %v3529_v17 }
 0xe0d   : > { %2784 = vmatpush3.bf16.msra.mxu1 %v2969_v61 }
 0xe0e   : > { %2785 = vmatprep.subr.bf16.mxu1 %v3529_v17 }
 0xe11   : > { %2786 = vmatpush3.bf16.msra.mxu1 %v2970_v62 }
 0xe12   : > { %2787 = vmatprep.subr.bf16.mxu1 %v3529_v17 }
 0xe15   : > { %2788 = vmatpush3.bf16.msra.mxu1 %v2971_v63 }
 0xe16   : > { %2789 = vmatprep.subr.bf16.mxu1 %v3529_v17 }
 0xe19   : > { %2790 = vmatpush3.bf16.msra.mxu1 %v2972_v0 }
 0xe1a   : > { %2791 = vmatprep.subr.bf16.mxu1 %v3529_v17 }
 0xe1d   : > { %2792 = vmatpush3.bf16.msra.mxu1 %v2973_v1 }
 0xed3   : > { %v1971_v24 = vpop.f32.mrb[28].mxu1 }
 0xed4   : > { %v1972_v25 = vadd.f32 %v2579_v23, %v1971_v24  ;;  %v2767_v32 = vpop.f32.mrb[29].mxu1 }
 0xed5   : > { %v1974_v26 = vpop.f32.mrb[30].mxu1 }
 0xed6   : > { %v4340_v28 = vadd.f32 %v1972_v25, %v4154_v2  ;;  %v1975_v27 = vadd.f32 %v2579_v23, %v1974_v26  ;;  %v2768_v29 = vpop.f32.mrb[31].mxu1  ;;  %v2589_v25 = vld [vmem:[%s776_s3] ss:$0 sm:$0xff] }
 0xed8   : > { %v4343_v30 = vadd.f32 %v1975_v27, %v4156_v3  ;;  %v1982_v31 = vsel %vm876_vm1, %v4340_v28, 0.0 }
 0xed9   : > { %1983 = vadd.xlane.f32.xlu1 %v1982_v31 }
 0xeda   : > { %v1985_v33 = vsel %vm876_vm1, %v4343_v30, 0.0 }
 0xedb   : > { %1986 = vadd.xlane.f32.xlu0 %v1985_v33 }
 0xf66   : > { %v1984_v34 = vpop.xlane.xlu1 %1983 }
 0xf67   : > { %v1988_v35 = vmul.f32 0.03125, %v1984_v34 }
 0xf68   : > { %v1987_v2 = vpop.xlane.xlu0 %1986 }
 0xf69   : > { %v1990_v36 = vsub.f32 %v4340_v28, %v1988_v35  ;;  %v1989_v37 = vmul.f32 0.03125, %v1987_v2 }
 0xf6b   : > { %v1991_v3 = vsub.f32 %v4343_v30, %v1989_v37  ;;  %v1992_v38 = vmul.f32 %v1990_v36, %v1990_v36 }
 0xf6d   : > { %v1994_v39 = vsel %vm876_vm1, %v1992_v38, 0.0  ;;  %v1993_v40 = vmul.f32 %v1991_v3, %v1991_v3 }
 0xf6e   : > { %1995 = vadd.xlane.f32.xlu0 %v1994_v39 }
 0xf6f   : > { %v1997_v42 = vsel %vm876_vm1, %v1993_v40, 0.0 }
 0xf72   : > { %1998 = vadd.xlane.f32.xlu0 %v1997_v42 }
 0xffb   : > { %v1996_v22 = vpop.xlane.xlu0 %1995 }
 0xffc   : > { %v2000_v45 = vmul.f32 0.03125, %v1996_v22 }
 0xffe   : > { %v2002_v46 = vadd.f32 1e-05, %v2000_v45 }
 0xfff   : > { %v1999_v47 = vpop.xlane.xlu0 %1998 }
0x1000   : > { %3010 = vrsqrt.f32 %v2002_v46  ;;  %v2001_v48 = vmul.f32 0.03125, %v1999_v47 }
0x1002   : > { %v2003_v49 = vadd.f32 1e-05, %v2001_v48 }
0x1004   : > { %3012 = vrsqrt.f32 %v2003_v49 }
0x100a   : > { %v3011_v50 = vpop.eup %3010 }
0x100b   : > { %v2006_v51 = vmul.f32 %v3011_v50, %v1990_v36 }
0x100d   : > { %v2014_v41 = vmul.f32 %v2583_v52, %v2006_v51 }
0x100e   : > { %v3013_v53 = vpop.eup %3012 }
0x100f   : > { %v2007_v54 = vmul.f32 %v3013_v53, %v1991_v3  ;;  %v2022_v57 = vadd.f32 %v2584_v55, %v2014_v41 }
0x1011   : > { %v2015_v56 = vmul.f32 %v2583_v52, %v2007_v54 }
0x1013   : > { %v2023_v58 = vadd.f32 %v2584_v55, %v2015_v56 }
0x1015   : > { %v2024_v59 = vpack.c.bf16 %v2023_v58, %v2022_v57 }
0x1017   : > { %2774 = vmatmul.mubr.msk.bf16.vlgmr.msra.gmra.mrb[40].mxu0 %vm876_vm1, %v2024_v59 }
0x10ea   : > { %v2085_v5 = vpop.f32.mrb[40].mxu0 }
0x10eb   : > { %v2086_v6 = vadd.f32 %v2585_v4, %v2085_v5  ;;  %v2775_v7 = vpop.f32.mrb[41].mxu0 }
0x10ec   : > { %v2088_v8 = vpop.f32.mrb[42].mxu0 }
0x10ed   : > { %v2094_v9 = vmul.f32 0.70710677, %v2086_v6  ;;  %v2089_v10 = vadd.f32 %v2585_v4, %v2088_v8  ;;  %v2776_v11 = vpop.f32.mrb[43].mxu0  ;;  %v2092_v18 = vmul.f32 0.5, %v2086_v6 }
0x10ef   : > { %3014 = verf.f32 %v2094_v9  ;;  %v2095_v12 = vmul.f32 0.70710677, %v2089_v10  ;;  %v2093_v17 = vmul.f32 0.5, %v2089_v10 }
0x10f1   : > { %3016 = verf.f32 %v2095_v12 }
0x10f9   : > { %v3015_v13 = vpop.eup %3014 }
0x10fa   : > { %v2098_v14 = vadd.f32 1.0, %v3015_v13 }
0x10fb   : > { %v3017_v15 = vpop.eup %3016 }
0x10fc   : > { %v2099_v19 = vadd.f32 1.0, %v3017_v15  ;;  %v2100_v20 = vmul.f32 %v2098_v14, %v2092_v18 }
0x10fe   : > { %v2101_v23 = vmul.f32 %v2099_v19, %v2093_v17 }
0x1100   : > { %v2102_v24 = vpack.c.bf16 %v2101_v23, %v2100_v20 }
0x1102   : > { %2794 = vmatmul.mubr.bf16.vlgmr.msra.gmra.mrb[32].mxu1 %v2102_v24 }
0x11d5   : > { %v2208_v32 = vpop.f32.mrb[32].mxu1 }
0x11d6   : > { %v2209_v26 = vadd.f32 %v2589_v25, %v2208_v32  ;;  %v2795_v27 = vpop.f32.mrb[33].mxu1  ;;  %2222 = sbr.rel (%p2598_p2) target bundleno = 4576 (0x11e0), region = 132 }
0x11d7   : > { %v2211_v29 = vpop.f32.mrb[34].mxu1 }
0x11d8   : > { %v2215_v31 = vadd.f32 %v2209_v26, %v4340_v28  ;;  %v2212_v33 = vadd.f32 %v2589_v25, %v2211_v29  ;;  %v2796_v34 = vpop.f32.mrb[35].mxu1 }
0x11da   : > { %2217 = vst.msk [vmem:[#allocation2] sm:$0xff] %vm876_vm1, %v2215_v31  ;;  %v2216_v35 = vadd.f32 %v2212_v33, %v4343_v30 }
0x11dc   : > { %2218 = vst.msk [vmem:[#allocation2 + $0x8] sm:$0xff] %vm876_vm1, %v2216_v35  ;;  %v2225_v2 = vrot.slane (!%p2598_p2), %v2216_v35, 7 }
0x11de   : > { %v2227_v36 = vsel %vm2226_vm7, %v2225_v2, %v2215_v31 }
0x11df   : > { %2230 = vst.msk [vmem:[#allocation24] sm:$0x3] %vm2229_vm8, %v2227_v36 }
0x11e0 PF: > { %p2873_p5 = scmp.eq.s32.totalorder %s3891_s24, 1  ;;  %s3545_s14 = smov [#allocation24]  }
0x11e1   : > { %s2240_s13 = sshll.u32 %s3545_s14, 4  ;;  %s2241_s13 = int_to_ptr.vmem [resolvable:$true] %s2240_s13 }
0x11e2   : > { %s3406_s18 = scalar_lea.vmem %s2241_s13, 32  ;;  %p3413_p13 = scmp.lt.s32.totalorder %s2241_s13, %s2241_s13 }
0x11e3   : > { %p3407_p10 = scmp.ne.s32.totalorder %s2241_s13, %s3406_s18  ;;  %p3414_p8 = scmp.lt.s32.totalorder %s3406_s18, %s3406_s18 }
0x11e5   : > { %p3408_p1 = pnand %p3407_p10, %p2873_p5  ;;  %p3415_p6 = por %p3414_p8, %p3413_p13 }
0x11e7   : > { %p3409_p4 = pneg %p3408_p1 }
0x11e9   : > { %p3416_p11 = pnand %p3415_p6, %p3409_p4 }
0x11eb   : > { %3419 = shalt.err (!%p3416_p11)
}
0x11ec   : > { %s4514_s5 = sld [smem:[#allocation45_spill]] }
0x11f2   : > { %s3420_s3 = scalar_lea.hbm %s4514_s5, 32 }
0x11f3   : > { %p3421_p3 = scmp.ne.s32.totalorder %s4514_s5, %s3420_s3  ;;  %p3426_p12 = scmp.lt.u32.totalorder %s3420_s3, %s4514_s5 }
0x11f5   : > { %p3422_p0 = pnand %p3421_p3, %p2873_p5 }
0x11f7   : > { %p3423_p9 = pneg %p3422_p0 }
0x11f9   : > { %p3428_p7 = pnand %p3426_p12, %p3423_p9 }
0x11fb   : > { %3431 = shalt.err (!%p3428_p7)
}
0x11fc   : > { %2826 = dma.vmem_to_hbm [thread:$0]  (%p2873_p5), %s2241_s13, 32, %s4514_s5, [#allocation5]  }
0x11fd   : > { %3485 = dma.done.wait (%p2873_p5), [#allocation5], 32  }
0x11fe   : > { %3487 = vsyncadd (%p2873_p5), [#allocation5], 4294967264 }
0x11ff PF: > { %s43_s30 = sadd.s32 1, %s3510_s30   ;;  %s4515_s20 = sld [smem:[#allocation33_spill]] }
0x1200   : > { %p40_p2 = scmp.ge.s32.totalorder %s43_s30, 4   ;;  %s4516_s27 = sld [smem:[#allocation36_spill]] }
0x1201   : > { %s4517_s21 = sld [smem:[#allocation35_spill]]  ;;  %s4518_s25 = smov %s3494_s26 }
0x1202   : > { %s4520_s28 = smov %s3506_s29  ;;  %42 = sbr.rel (!%p40_p2) target bundleno = 26 (0x1a), region = 255 }
0x1205   : > { %s4519_s26 = smov %s4515_s20 }
0x1207   : > { %s4521_s29 = smov %s4517_s21 }
0x1209   :  { %2253 = vsyncpa [#allocation4], 1 }
0x120a   :  { %2255 = vsyncpa [#allocation4 + $0x1], 1 }
0x120b   :  { %2256 = vsyncpa [#allocation7], 1 }
0x120c   :  { %2258 = vsyncpa [#allocation7 + $0x1], 1 }
0x120d   :  { %2259 = vsyncpa [#allocation10], 1 }
0x120e   :  { %2261 = vsyncpa [#allocation10 + $0x1], 1 }
0x120f   :  { %2262 = vsyncpa [#allocation13], 1 }
0x1210   :  { %2264 = vsyncpa [#allocation13 + $0x1], 1 }
0x1211   :  { %2265 = vsyncpa [#allocation16], 1 }
0x1212   :  { %2267 = vsyncpa [#allocation16 + $0x1], 1 }
0x1213   :  { %2268 = vsyncpa [#allocation19], 1 }
0x1214   :  { %2270 = vsyncpa [#allocation19 + $0x1], 1 }
0x1215   :  { %2271 = vsyncpa [#allocation22], 1 }
0x1216   :  { %2273 = vsyncpa [#allocation22 + $0x1], 1 }
0x1217   :  { %2274 = vsyncpa [#allocation5], 1 }
0x1218   :  { %2276 = vsyncpa [#allocation5 + $0x1], 1 }

</bundles_post_ra>
